<compile_context>
chip_gen: v7x
topology: tpu7x:2x2x1
jax: 0.10.0
libtpu: 0.0.40
codegen_flags: <defaults>
</compile_context>

<pallas_src>
import functools

import numpy as np
import jax
import jax.numpy as jnp
from jax import lax
from jax.experimental import pallas as pl
from jax.experimental.pallas import tpu as pltpu


def _vmem_params(need_bytes, sem):
    """CompilerParams with an explicit scoped-VMEM limit derived from the block footprint."""
    limit = int(min(100 << 20, max(32 << 20, 2 * int(need_bytes))))
    return pltpu.CompilerParams(dimension_semantics=sem, vmem_limit_bytes=limit)


# ----------------------------------------------------------------------------------
# Kernel 1: voxel projection (batched matmul over all views, tiled over voxels)
# ----------------------------------------------------------------------------------

def _proj_kernel(pm_ref, grid_ref, out_ref, *, w, h, n_views):
    """pm_ref: (3V,4) stacked [x-rows | y-rows | z-rows]; grid_ref: (4, TP).

    Writes a single merged (3V, TP) slab [gx | gy | mask] (one lane-dense store).
    """
    im = jnp.dot(pm_ref[...], grid_ref[...], preferred_element_type=jnp.float32)  # (3V, TP)
    V = n_views
    im_x = im[0:V]
    im_y = im[V:2 * V]
    im_z = im[2 * V:3 * V]
    # Exact reciprocal (feeds floor() in bilinear tap selection downstream); the
    # guard condition matches the validity condition (z > 0) exactly.
    safe_z = jnp.where(im_z > 0.0, im_z, 1.0)
    inv_z = 1.0 / safe_z
    gx = 2.0 * (im_x * inv_z) / (w - 1.0) - 1.0
    gy = 2.0 * (im_y * inv_z) / (h - 1.0) - 1.0
    valid = (jnp.abs(gx) <= 1.0) & (jnp.abs(gy) <= 1.0) & (im_z > 0.0)
    # Zero coords of invalid views so no inf/NaN can reach the sampling kernel
    # (their sampled features are masked to zero anyway, as in the reference).
    gx = jnp.where(valid, gx, 0.0)
    gy = jnp.where(valid, gy, 0.0)
    out_ref[...] = jnp.concatenate([gx, gy, valid.astype(jnp.float32)], axis=0)


def project_voxels(proj, grid_h, w, h, tp=2048):
    """proj: (V,4,4), grid_h: (4, Np) (Np multiple of tp) -> gx, gy, mask (V, Np)."""
    V = proj.shape[0]
    Np = grid_h.shape[1]
    # Stack projection rows as [all x-rows, all y-rows, all z-rows] -> one matmul.
    pm = jnp.concatenate([proj[:, 0, :], proj[:, 1, :], proj[:, 2, :]], axis=0)  # (3V, 4)
    kernel = functools.partial(_proj_kernel, w=float(w), h=float(h), n_views=V)
    out = pl.pallas_call(
        kernel,
        out_shape=jax.ShapeDtypeStruct((3 * V, Np), jnp.float32),
        grid=(Np // tp,),
        in_specs=[pl.BlockSpec((3 * V, 4), lambda i: (0, 0)),
                  pl.BlockSpec((4, tp), lambda i: (0, i))],
        out_specs=pl.BlockSpec((3 * V, tp), lambda i: (0, i)),
        compiler_params=pltpu.CompilerParams(dimension_semantics=("parallel",)),
    )(pm, grid_h)
    return out[:V], out[V:2 * V], out[2 * V:3 * V]


# ----------------------------------------------------------------------------------
# Kernel 2: fused fusion_down (1x1 conv) + 4x residual 3x3 conv, one view per step
# ----------------------------------------------------------------------------------

def _feat_conv_kernel(x_ref, w1_ref, b1_ref, wr_ref, br_ref, em_ref, o_ref, pbuf_ref,
                      *, H, W, n_res):
    """x_ref: (1, Call, HW) bf16 -> o_ref: (1, Cd, HW) f32 (channel-major, lane-dense)."""
    HW = H * W
    P = W + 1
    x = x_ref[0]                                                  # (Call, HW) bf16
    # TODO(synk): Conv2d_Block internals not provided; assumed conv1x1 + bias + ReLU.
    y = jnp.dot(w1_ref[...], x, preferred_element_type=jnp.float32) + b1_ref[...]
    v = jnp.maximum(y, 0.0)                                       # (Cd, HW) f32
    Cd = v.shape[0]

    lmask_b = em_ref[0:1, :].astype(jnp.bfloat16)                 # zero where w == 0
    rmask_b = em_ref[1:2, :].astype(jnp.bfloat16)                 # zero where w == W-1

    # Persistent zero-padded flat buffer [P zeros | HW data | P zeros] in VMEM
    # scratch: pads are zeroed once per view, only the center is rewritten per
    # layer (no per-layer concatenate materialization / re-zeroing).
    pbuf_ref[:, 0:P] = jnp.zeros((Cd, P), jnp.bfloat16)
    pbuf_ref[:, P + HW:P + HW + P] = jnp.zeros((Cd, P), jnp.bfloat16)

    for layer in range(n_res):
        # TODO(synk): Conv2d_Residual_Block internals not provided; assumed
        # conv3x3 (zero pad) + bias + residual + ReLU.
        pbuf_ref[:, P:P + HW] = v.astype(jnp.bfloat16)
        taps = []
        for dy in range(3):
            for dx in range(3):
                s = dy * W + dx                                   # lane offset of this tap
                xs = pbuf_ref[:, s:s + HW]
                if dx == 0:
                    xs = xs * lmask_b
                elif dx == 2:
                    xs = xs * rmask_b
                taps.append(xs)
        # All 9 taps folded into the contraction dim: one (Cd, 9Cd)@(9Cd, HW)
        # matmul per layer instead of 9 Cd-deep MXU pushes.
        xcat = jnp.concatenate(taps, axis=0)                      # (9*Cd, HW) bf16
        acc = jnp.dot(wr_ref[layer], xcat, preferred_element_type=jnp.float32)
        v = jnp.maximum(acc + br_ref[layer] + v, 0.0)
    o_ref[0] = v


def feature_conv_stack(x_bf16, w1, b1, wr, br, edge_masks, H, W):
    """x_bf16: (V, Call, H*W) bf16 -> (V, Cd, H*W) f32."""
    V, Call, HW = x_bf16.shape
    Cd = w1.shape[0]
    n_res = wr.shape[0]
    # Fold the 9 conv taps into the contraction dim: (n_res, 9, Cd, Cd) -> (n_res, Cd, 9*Cd),
    # tap-major along the contraction axis to match the in-kernel concatenation order.
    wr_f = jnp.transpose(wr, (0, 2, 1, 3)).reshape(n_res, Cd, 9 * Cd)
    kernel = functools.partial(_feat_conv_kernel, H=H, W=W, n_res=n_res)
    need = (2 * Call * HW * 2 + 2 * Cd * HW * 4                   # in/out blocks (double-buffered)
            + Cd * (HW + 2 * (W + 1)) * 2                         # persistent pad buffer
            + 2 * 9 * Cd * HW * 2 + 3 * Cd * HW * 4               # xcat + f32 temps
            + 2 * (n_res * Cd * 9 * Cd * 2 + Cd * Call * 2
                   + n_res * Cd * 4 + Cd * 4 + 2 * HW * 4))       # weights / masks
    # TODO(synk): on v7x (2 TensorCores) a V=3 grid load-balances 2:1; an HW lane-tile
    # axis with halo handling would give more parallel grid steps.
    return pl.pallas_call(
        kernel,
        out_shape=jax.ShapeDtypeStruct((V, Cd, HW), jnp.float32),
        grid=(V,),
        in_specs=[pl.BlockSpec((1, Call, HW), lambda v: (v, 0, 0)),
                  pl.BlockSpec((Cd, Call), lambda v: (0, 0)),
                  pl.BlockSpec((Cd, 1), lambda v: (0, 0)),
                  pl.BlockSpec((n_res, Cd, 9 * Cd), lambda v: (0, 0, 0)),
                  pl.BlockSpec((n_res, Cd, 1), lambda v: (0, 0, 0)),
                  pl.BlockSpec((2, HW), lambda v: (0, 0))],
        out_specs=pl.BlockSpec((1, Cd, HW), lambda v: (v, 0, 0)),
        scratch_shapes=[pltpu.VMEM((Cd, HW + 2 * (W + 1)), jnp.bfloat16)],
        compiler_params=_vmem_params(need, ("parallel",)),
    )(x_bf16, w1, b1, wr_f, br, edge_masks)


# ----------------------------------------------------------------------------------
# Kernel 3: fused grid-sample (one-hot matmul) + masked variance + occupancy head
#           grid = (voxel_tiles, views); views streamed as a reduction axis.
# ----------------------------------------------------------------------------------

def _sample_var_occ_kernel(feat_ref, gx_ref, gy_ref, m_ref, W_ref, vec_ref, o_ref,
                           sum_m_ref, sum_f_ref, sum_f2_ref,
                           *, H, W, b4, bn4_scale, bn4_bias):
    """feat_ref: (1, Cd, HW) bf16 (one view per step); gx/gy/m: (1, 1, TN); o: (1, TN)."""
    HW = H * W
    Cd = feat_ref.shape[1]
    TN = o_ref.shape[1]
    vi = pl.program_id(1)

    @pl.when(vi == 0)
    def _():
        sum_m_ref[...] = jnp.zeros_like(sum_m_ref)
        sum_f_ref[...] = jnp.zeros_like(sum_f_ref)
        sum_f2_ref[...] = jnp.zeros_like(sum_f2_ref)

    gxv = gx_ref[0]                                               # (1, TN)
    gyv = gy_ref[0]
    mv = m_ref[0]

    # Bilinear sampling, align_corners=True, padding_mode='zeros', expressed as a
    # one-hot interpolation matrix built directly in bf16 and applied on the MXU.
    ix = (gxv + 1.0) * ((W - 1.0) * 0.5)
    iy = (gyv + 1.0) * ((H - 1.0) * 0.5)
    ix0 = jnp.floor(ix)
    iy0 = jnp.floor(iy)
    wx1 = ix - ix0
    wy1 = iy - iy0
    wx0 = 1.0 - wx1
    wy0 = 1.0 - wy1
    in_x0 = (ix0 >= 0.0) & (ix0 <= W - 1.0)
    in_x1 = (ix0 >= -1.0) & (ix0 <= W - 2.0)                      # ix0+1 in bounds
    in_y0 = (iy0 >= 0.0) & (iy0 <= H - 1.0)
    in_y1 = (iy0 >= -1.0) & (iy0 <= H - 2.0)                      # iy0+1 in bounds
    w00 = jnp.where(in_x0 & in_y0, wx0 * wy0, 0.0).astype(jnp.bfloat16)
    w10 = jnp.where(in_x1 & in_y0, wx1 * wy0, 0.0).astype(jnp.bfloat16)
    w01 = jnp.where(in_x0 & in_y1, wx0 * wy1, 0.0).astype(jnp.bfloat16)
    w11 = jnp.where(in_x1 & in_y1, wx1 * wy1, 0.0).astype(jnp.bfloat16)
    idx00 = (jnp.clip(iy0, 0.0, H - 1.0).astype(jnp.int32) * W
             + jnp.clip(ix0, 0.0, W - 1.0).astype(jnp.int32))     # (1, TN)
    iota_p = lax.broadcasted_iota(jnp.int32, (HW, TN), 0)
    # Neighbor taps are +1, +W, +W+1 in the flattened HW axis; taps whose index
    # would wrap a row/image edge already carry a zero weight (coordinate OOB check).
    wint = (jnp.where(iota_p == idx00, w00, jnp.bfloat16(0.0))
            + jnp.where(iota_p == idx00 + 1, w10, jnp.bfloat16(0.0))
            + jnp.where(iota_p == idx00 + W, w01, jnp.bfloat16(0.0))
            + jnp.where(iota_p == idx00 + W + 1, w11, jnp.bfloat16(0.0)))  # (HW, TN) bf16
    fv = jnp.dot(feat_ref[0], wint, preferred_element_type=jnp.float32)    # (Cd, TN)
    fv = fv * mv                                                  # zero invalid views

    sum_m_ref[...] += mv
    sum_f_ref[...] += fv
    sum_f2_ref[...] += fv * fv

    @pl.when(vi == pl.num_programs(1) - 1)
    def _():
        # Masked single-pass variance across views (guarded against zero counts;
        # selected voxels always have count >= min_view_number >= 1).
        inv = 1.0 / jnp.maximum(sum_m_ref[...], 1.0)
        mean = sum_f_ref[...] * inv
        var = jnp.maximum(sum_f2_ref[...] * inv - mean * mean, 0.0)   # (Cd, TN)

        # Packed per-channel parameter columns:
        # 0 bn0_scale, 1 bn0_bias, 2-4 subm bias, 5-7 LN gamma, 8-10 LN beta, 11 w4.
        def col(k):
            return vec_ref[:, k:k + 1]

        v3d = var * col(0) + col(1)                               # norm0 (eval-mode BN)
        # TODO(synk): Spares3dELAN definition not provided; treated as identity.
        eps_ln = 1e-5
        for i in range(3):
            # TODO(synk): SparseSubMConv3d neighbor aggregation not provided;
            # center-tap linear approximation.
            r = jnp.dot(W_ref[i], v3d.astype(jnp.bfloat16),
                        preferred_element_type=jnp.float32) + col(2 + i)
            r = jnp.maximum(r, 0.0) + v3d
            mu = jnp.mean(r, axis=0, keepdims=True)
            va = jnp.mean((r - mu) * (r - mu), axis=0, keepdims=True)
            v3d = (r - mu) * lax.rsqrt(va + eps_ln) * col(5 + i) + col(8 + i)

        occ = jnp.sum(v3d * col(11), axis=0, keepdims=True) + b4  # subm4 -> 1 channel
        o_ref[...] = occ * bn4_scale + bn4_bias                   # norm4 (eval-mode BN)


def sample_var_occ(feat_bf16, gx, gy, mask, W_stack, vecs, H, W, *,
                   b4, bn4_scale, bn4_bias, tn=1024):
    """feat_bf16: (V, Cd, HW); gx/gy/mask: (V, Nvp) -> occ (1, Nvp)."""
    Vn, Cd, HW = feat_bf16.shape
    Nvp = gx.shape[1]
    kernel = functools.partial(_sample_var_occ_kernel, H=H, W=W,
                               b4=b4, bn4_scale=bn4_scale, bn4_bias=bn4_bias)
    need = (2 * Cd * HW * 2                                       # one streamed view slab x2
            + 2 * 3 * tn * 4 + 2 * tn * 4                         # gx/gy/mask/out blocks
            + (1 + 2 * Cd) * tn * 4                               # accumulator scratch
            + 6 * HW * tn * 2                                     # bf16 one-hot temporaries
            + 2 * (3 * Cd * Cd * 2 + Cd * 16 * 4))                # head weights
    # View axis of gx/gy/mask exposed as a leading dim so per-view (1,1,tn) blocks
    # satisfy the (8,128) block constraints.
    gx3 = gx[:, None, :]
    gy3 = gy[:, None, :]
    m3 = mask[:, None, :]
    return pl.pallas_call(
        kernel,
        out_shape=jax.ShapeDtypeStruct((1, Nvp), jnp.float32),
        grid=(Nvp // tn, Vn),                                     # views = reduction axis (last)
        in_specs=[pl.BlockSpec((1, Cd, HW), lambda i, v: (v, 0, 0)),
                  pl.BlockSpec((1, 1, tn), lambda i, v: (v, 0, i)),
                  pl.BlockSpec((1, 1, tn), lambda i, v: (v, 0, i)),
                  pl.BlockSpec((1, 1, tn), lambda i, v: (v, 0, i)),
                  pl.BlockSpec((3, Cd, Cd), lambda i, v: (0, 0, 0)),
                  pl.BlockSpec((Cd, 16), lambda i, v: (0, 0))],
        out_specs=pl.BlockSpec((1, tn), lambda i, v: (0, i)),
        scratch_shapes=[pltpu.VMEM((1, tn), jnp.float32),         # sum of masks
                        pltpu.VMEM((Cd, tn), jnp.float32),        # sum of features
                        pltpu.VMEM((Cd, tn), jnp.float32)],       # sum of squares
        compiler_params=_vmem_params(need, ("parallel", "arbitrary")),
    )(feat_bf16, gx3, gy3, m3, W_stack, vecs)


# ----------------------------------------------------------------------------------
# Glue (plain JAX): resize / pool / concat / valid-voxel selection
# ----------------------------------------------------------------------------------

def feat_fusion_pre(f1x, f2x, f4x, params, edge_masks):
    """Mirror of Occupancy_Initialization.feat_fusion_pre (views act as batch)."""
    # TODO(synk): Fusion_Block (self_fusion_*) definition not provided; treated as identity.
    V, C0, H1, W1 = f1x.shape
    _, C1, H, W = f2x.shape
    C2 = f4x.shape[1]
    f1u = jax.image.resize(f1x, (V, C0, 2 * H1, 2 * W1), method='bilinear')   # interpolate x2
    f4p = f4x.reshape(V, C2, H, 2, W, 2).mean(axis=(3, 5))                    # AvgPool2d(2)
    fus = jnp.concatenate([f1u, f2x, f4p], axis=1)                            # (V, Call, H, W)
    x = fus.reshape(V, fus.shape[1], H * W).astype(jnp.bfloat16)              # channel-major
    y = feature_conv_stack(x, params['fusion_down_w'], params['fusion_down_b'],
                           params['res_w'], params['res_b'], edge_masks, H, W)
    return y                                                                  # (V, Cd, H*W)


def _pad_lanes(x, mult, value=0.0):
    n = x.shape[-1]
    p = (-n) % mult
    if p == 0:
        return x
    pw = [(0, 0)] * x.ndim
    pw[-1] = (0, p)
    return jnp.pad(x, pw, constant_values=value)


def _pick_voxel_tile(HW):
    """Voxel lane tile sized so the bf16 (HW, tn) interpolation slab + temporaries
    stay well inside v7x's 64 MiB VMEM with double-buffered inputs."""
    tn = 1024
    while tn > 256 and HW * tn * 2 > (8 << 20):
        tn //= 2
    return tn


# ----------------------------------------------------------------------------------
# Forward pass (mirrors Occupancy_Initialization.forward)
# ----------------------------------------------------------------------------------

def occupancy_initialization_forward(coords, origin, voxel_size, features_all, KRcam,
                                     shape, stage, min_view_number, params):
    del shape  # spatial shape only used by the (approximated) sparse 3D convs
    feats_1x = jnp.stack([f[2] for f in features_all])   # (V, bs, C0, H1, W1)
    feats_2x = jnp.stack([f[1] for f in features_all])   # (V, bs, C1, H2, W2)
    feats_4x = jnp.stack([f[0] for f in features_all])   # (V, bs, C2, H4, W4)

    if stage == 0:
        n_views, bs, _, h, w = feats_1x.shape
    elif stage == 1:
        n_views, bs, _, h, w = feats_2x.shape
    else:
        n_views, bs, _, h, w = feats_4x.shape

    # Fused feature map always lives at the feats_2x resolution.
    _, _, _, fh, fw = feats_2x.shape
    col_idx = jnp.arange(fh * fw, dtype=jnp.int32) % fw
    edge_masks = jnp.stack([(col_idx != 0), (col_idx != fw - 1)]).astype(jnp.float32)

    count = jnp.zeros((coords.shape[0],), jnp.float32)
    occ_list, coord_list = [], []
    tn = _pick_voxel_tile(fh * fw)   # voxel lane-tile for the fused sample/var/occupancy kernel
    tp = 2048                        # voxel lane-tile for the projection kernel

    for batch in range(bs):
        # TODO(synk): data-dependent valid-voxel selection (nonzero / boolean indexing)
        # and the <1000 early return are host-side, as in the reference.
        batch_ind = jnp.nonzero(coords[:, 0] == batch)[0]
        coords_b = coords[batch_ind]                                 # (Nb, 4)
        coords_xyz = coords_b[:, 1:].astype(jnp.float32)             # (Nb, 3)
        Nb = coords_xyz.shape[0]

        origin_b = origin[batch][None, :].astype(jnp.float32)        # (1, 3)
        proj_b = KRcam[:, batch]                                     # (V, 4, 4)

        grid_w = coords_xyz * voxel_size + origin_b                  # world coords (Nb, 3)
        grid_h = jnp.concatenate([grid_w.T, jnp.ones((1, Nb), jnp.float32)], axis=0)
        Np = Nb + ((-Nb) % tp)
        grid_h = jnp.pad(grid_h, ((0, 0), (0, Np - Nb)), mode='edge')

        gx, gy, maskf = project_voxels(proj_b, grid_h, w, h, tp=tp)  # each (V, Np)
        gx, gy, maskf = gx[:, :Nb], gy[:, :Nb], maskf[:, :Nb]

        count_b = maskf.sum(axis=0)                                  # (Nb,)
        count = count.at[batch_ind].set(count_b)
        valid = count_b >= float(min_view_number)
        num_valid = int(jnp.sum(valid))
        if num_valid < 10 * 10 * 10:
            return None

        valid_idx = jnp.nonzero(valid)[0]
        gx_v = gx[:, valid_idx]
        gy_v = gy[:, valid_idx]
        mask_v = maskf[:, valid_idx]                                 # (V, Nv) in {0,1}
        Nv = int(valid_idx.shape[0])

        fused = feat_fusion_pre(feats_1x[:, batch], feats_2x[:, batch],
                                feats_4x[:, batch], params, edge_masks)  # (V, Cd, fh*fw)
        fused_b = fused.astype(jnp.bfloat16)

        gx_p = _pad_lanes(gx_v, tn, 0.0)
        gy_p = _pad_lanes(gy_v, tn, 0.0)
        mask_p = _pad_lanes(mask_v, tn, 0.0)                         # padded voxels: count 0

        occ = sample_var_occ(fused_b, gx_p, gy_p, mask_p,
                             params['W_stack'], params['vecs'], fh, fw,
                             b4=float(params['b4']),
                             bn4_scale=float(params['bn4_scale']),
                             bn4_bias=float(params['bn4_bias']),
                             tn=tn)                                  # (1, Nvp)

        occ_list.append(occ[0, :Nv].reshape(Nv, 1))
        coord_list.append(coords_b[valid_idx])

    occ_init = jnp.concatenate(occ_list, axis=0)
    coord_init = jnp.concatenate(coord_list, axis=0)
    return [occ_init, coord_init, count]


# ----------------------------------------------------------------------------------
# Deterministic parameter init (shapes per module __init__)
# ----------------------------------------------------------------------------------

def init_params(key, ch_all, ch_down):
    C0, C1, C2 = ch_all
    Call = C0 + C1 + C2
    Cd = ch_down
    keys = jax.random.split(key, 6)
    eps = 1e-5

    # Packed per-channel chain vectors (Cd, 16):
    # 0 bn0_scale, 1 bn0_bias, 2-4 subm bias, 5-7 LN gamma, 8-10 LN beta, 11 w4.
    vecs = jnp.zeros((Cd, 16), jnp.float32)
    vecs = vecs.at[:, 0].set(1.0 / np.sqrt(1.0 + eps))     # BN eval: gamma=1, rm=0, rv=1
    vecs = vecs.at[:, 5:8].set(1.0)                        # LN gamma
    vecs = vecs.at[:, 11].set(0.1 * jax.random.normal(keys[0], (Cd,), jnp.float32))

    params = {
        'fusion_down_w': (0.1 * jax.random.normal(keys[1], (Cd, Call), jnp.float32)
                          ).astype(jnp.bfloat16),
        'fusion_down_b': jnp.zeros((Cd, 1), jnp.float32),
        'res_w': (0.05 * jax.random.normal(keys[2], (4, 9, Cd, Cd), jnp.float32)
                  ).astype(jnp.bfloat16),
        'res_b': jnp.zeros((4, Cd, 1), jnp.float32),
        'W_stack': (0.1 * jax.random.normal(keys[3], (3, Cd, Cd), jnp.float32)
                    ).astype(jnp.bfloat16),
        'vecs': vecs,
        'b4': 0.1,
        'bn4_scale': float(1.0 / np.sqrt(1.0 + eps)),
        'bn4_bias': 0.0,
    }
    return params


# ----------------------------------------------------------------------------------
# Demo harness
# ----------------------------------------------------------------------------------

if __name__ == "__main__":
    key = jax.random.PRNGKey(0)

    n_views, bs = 3, 1
    ch_all = (8, 8, 8)
    ch_down = 16
    stage = 1
    min_view_number = 2
    spatial_shape = (16, 16, 16)
    voxel_size = 0.125

    # features_all: list over views of [feat_4x, feat_2x, feat_1x] (NCHW, per PyTorch).
    features_all = []
    for v in range(n_views):
        key, k1, k2, k3 = jax.random.split(key, 4)
        f4 = jax.random.normal(k1, (bs, ch_all[2], 32, 32), jnp.float32)
        f2 = jax.random.normal(k2, (bs, ch_all[1], 16, 16), jnp.float32)
        f1 = jax.random.normal(k3, (bs, ch_all[0], 8, 8), jnp.float32)
        features_all.append([f4, f2, f1])

    # Voxel grid: 16 x 16 x 8 = 2048 voxels, all in batch 0.
    xs, ys, zs = jnp.meshgrid(jnp.arange(16), jnp.arange(16), jnp.arange(8), indexing='ij')
    xyz = jnp.stack([xs, ys, zs], axis=-1).reshape(-1, 3).astype(jnp.int32)
    coords = jnp.concatenate([jnp.zeros((xyz.shape[0], 1), jnp.int32), xyz], axis=1)
    origin = jnp.array([[-1.0, -1.0, 1.0]], jnp.float32)

    # Simple pinhole cameras (stage-1 resolution 16x16), tiny per-view translation.
    h = w = 16
    fx = fy = cx = cy = (w - 1) / 2.0
    K = jnp.array([[fx, 0, cx, 0], [0, fy, cy, 0], [0, 0, 1, 0], [0, 0, 0, 1]], jnp.float32)
    cams = []
    for tx in (-0.02, 0.0, 0.02):
        T = jnp.eye(4, dtype=jnp.float32).at[0, 3].set(tx)
        cams.append(K @ T)
    KRcam = jnp.stack(cams)[:, None]                 # (n_views, bs, 4, 4)

    key, kparam = jax.random.split(key)
    params = init_params(kparam, ch_all, ch_down)

    result = occupancy_initialization_forward(
        coords, origin, voxel_size, features_all, KRcam,
        spatial_shape, stage, min_view_number, params)

    assert result is not None, "fewer than 1000 valid voxels"
    occ_init, coord_init, count = result
    jax.block_until_ready(occ_init)
    jax.block_until_ready(coord_init)
    jax.block_until_ready(count)
    assert occ_init.shape[1] == 1 and coord_init.shape[1] == 4
    assert bool(jnp.all(jnp.isfinite(occ_init)))
    print("KERNEL_OK")
</pallas_src>

<mosaic_0001>
module attributes {stable_mosaic.version = 11 : i64} {
  func.func @_proj_kernel(%arg0: i32, %arg1: memref<9x4xf32, #tpu.memory_space<vmem>>, %arg2: memref<4x2048xf32, #tpu.memory_space<vmem>>, %arg3: memref<9x2048xf32, #tpu.memory_space<vmem>>) attributes {dimension_semantics = [#tpu.dimension_semantics<parallel>], iteration_bounds = array<i64: 1>, scalar_prefetch = 0 : i64, scratch_operands = 0 : i64, tpu.core_type = #tpu.core_type<tc>, window_params = [{pipeline_mode = #tpu.pipeline_mode<synchronous>, transform_indices = @transform_0, window_bounds = array<i64: 9, 4>}, {transform_indices = @transform_1, window_bounds = array<i64: 4, 2048>}, {transform_indices = @transform_2, window_bounds = array<i64: 9, 2048>}]} {
    %c0 = arith.constant 0 : index
    %c0_0 = arith.constant 0 : index
    %0 = vector.load %arg1[%c0, %c0_0] : memref<9x4xf32, #tpu.memory_space<vmem>>, vector<9x4xf32>
    %c0_1 = arith.constant 0 : index
    %c0_2 = arith.constant 0 : index
    %1 = vector.load %arg2[%c0_1, %c0_2] : memref<4x2048xf32, #tpu.memory_space<vmem>>, vector<4x2048xf32>
    %cst = arith.constant dense<0.000000e+00> : vector<9x2048xf32>
    %2 = tpu.matmul %0, %1, %cst {dimension_numbers = #tpu.dot_dimension_numbers<[1], [0], [0], [1], [0, 0, 1, 1], [], []>} : vector<9x4xf32>, vector<4x2048xf32>, vector<9x2048xf32> -> vector<9x2048xf32>
    %3 = vector.extract_strided_slice %2 {offsets = [0, 0], sizes = [3, 2048], strides = [1, 1]} : vector<9x2048xf32> to vector<3x2048xf32>
    %4 = vector.extract_strided_slice %2 {offsets = [3, 0], sizes = [3, 2048], strides = [1, 1]} : vector<9x2048xf32> to vector<3x2048xf32>
    %5 = vector.extract_strided_slice %2 {offsets = [6, 0], sizes = [3, 2048], strides = [1, 1]} : vector<9x2048xf32> to vector<3x2048xf32>
    %cst_3 = arith.constant 0.000000e+00 : f32
    %6 = vector.broadcast %cst_3 : f32 to vector<3x2048xf32>
    %7 = arith.cmpf ogt, %5, %6 : vector<3x2048xf32>
    %cst_4 = arith.constant 1.000000e+00 : f32
    %8 = vector.broadcast %cst_4 : f32 to vector<3x2048xf32>
    %9 = arith.select %7, %5, %8 : vector<3x2048xi1>, vector<3x2048xf32>
    %cst_5 = arith.constant 1.000000e+00 : f32
    %10 = vector.broadcast %cst_5 : f32 to vector<3x2048xf32>
    %11 = arith.divf %10, %9 : vector<3x2048xf32>
    %12 = arith.mulf %3, %11 : vector<3x2048xf32>
    %cst_6 = arith.constant 2.000000e+00 : f32
    %13 = vector.broadcast %cst_6 : f32 to vector<3x2048xf32>
    %14 = arith.mulf %13, %12 : vector<3x2048xf32>
    %cst_7 = arith.constant 1.500000e+01 : f32
    %15 = vector.broadcast %cst_7 : f32 to vector<3x2048xf32>
    %16 = arith.divf %14, %15 : vector<3x2048xf32>
    %cst_8 = arith.constant 1.000000e+00 : f32
    %17 = vector.broadcast %cst_8 : f32 to vector<3x2048xf32>
    %18 = arith.subf %16, %17 : vector<3x2048xf32>
    %19 = arith.mulf %4, %11 : vector<3x2048xf32>
    %cst_9 = arith.constant 2.000000e+00 : f32
    %20 = vector.broadcast %cst_9 : f32 to vector<3x2048xf32>
    %21 = arith.mulf %20, %19 : vector<3x2048xf32>
    %cst_10 = arith.constant 1.500000e+01 : f32
    %22 = vector.broadcast %cst_10 : f32 to vector<3x2048xf32>
    %23 = arith.divf %21, %22 : vector<3x2048xf32>
    %cst_11 = arith.constant 1.000000e+00 : f32
    %24 = vector.broadcast %cst_11 : f32 to vector<3x2048xf32>
    %25 = arith.subf %23, %24 : vector<3x2048xf32>
    %26 = math.absf %18 : vector<3x2048xf32>
    %cst_12 = arith.constant 1.000000e+00 : f32
    %27 = vector.broadcast %cst_12 : f32 to vector<3x2048xf32>
    %28 = arith.cmpf ole, %26, %27 : vector<3x2048xf32>
    %29 = math.absf %25 : vector<3x2048xf32>
    %cst_13 = arith.constant 1.000000e+00 : f32
    %30 = vector.broadcast %cst_13 : f32 to vector<3x2048xf32>
    %31 = arith.cmpf ole, %29, %30 : vector<3x2048xf32>
    %32 = arith.andi %28, %31 : vector<3x2048xi1>
    %cst_14 = arith.constant 0.000000e+00 : f32
    %33 = vector.broadcast %cst_14 : f32 to vector<3x2048xf32>
    %34 = arith.cmpf ogt, %5, %33 : vector<3x2048xf32>
    %35 = arith.andi %32, %34 : vector<3x2048xi1>
    %cst_15 = arith.constant 0.000000e+00 : f32
    %36 = vector.broadcast %cst_15 : f32 to vector<3x2048xf32>
    %37 = arith.select %35, %18, %36 : vector<3x2048xi1>, vector<3x2048xf32>
    %cst_16 = arith.constant 0.000000e+00 : f32
    %38 = vector.broadcast %cst_16 : f32 to vector<3x2048xf32>
    %39 = arith.select %35, %25, %38 : vector<3x2048xi1>, vector<3x2048xf32>
    %40 = arith.extui %35 : vector<3x2048xi1> to vector<3x2048xi32>
    %41 = arith.sitofp %40 : vector<3x2048xi32> to vector<3x2048xf32>
    %42 = tpu.concatenate %37, %39, %41 in 0 : vector<3x2048xf32>, vector<3x2048xf32>, vector<3x2048xf32> -> vector<9x2048xf32>
    %c0_17 = arith.constant 0 : index
    %c0_18 = arith.constant 0 : index
    %43 = vector.load %arg3[%c0_17, %c0_18] : memref<9x2048xf32, #tpu.memory_space<vmem>>, vector<9x2048xf32>
    tpu.vector_store %arg3[%c0_17, %c0_18], %42 {strides = array<i32>} : memref<9x2048xf32, #tpu.memory_space<vmem>>, vector<9x2048xf32>,
    return
  }
  func.func @transform_0(%arg0: i32) -> (i32, i32) {
    %c0_i32 = arith.constant 0 : i32
    %c0_i32_0 = arith.constant 0 : i32
    %c0_i32_1 = arith.constant 0 : i32
    return %c0_i32, %c0_i32_0 : i32, i32
  }
  func.func @transform_1(%arg0: i32) -> (i32, i32) {
    %c0_i32 = arith.constant 0 : i32
    %c0_i32_0 = arith.constant 0 : i32
    return %c0_i32, %arg0 : i32, i32
  }
  func.func @transform_2(%arg0: i32) -> (i32, i32) {
    %c0_i32 = arith.constant 0 : i32
    %c0_i32_0 = arith.constant 0 : i32
    return %c0_i32, %arg0 : i32, i32
  }
}

</mosaic_0001>

<bundles_post_ra>
// kernel: tpu_custom_call.1
= control target key start
LH: loop header
LB: loop body
LE: loop exit
PB: predicated region body
PF: predicated region fallthrough
CT: control target
= control target key end

     0   :  { %7 = vsyncpa [#allocation3], 0  ;;  %s2715_s0 = inlined_call_operand.vmem [shape: f32[9,4], index: 0, kind: input, shape index: {}]   ;;  %s2716_s1 = inlined_call_operand.hbm [shape: f32[4,2048], index: 1, kind: input, shape index: {}]   ;;  %s2717_s2 = inlined_call_operand.hbm [shape: f32[9,2048], index: 2, kind: output, shape index: {}]  }
   0x1   :  { %8 = vsyncpa [#allocation4], 0  ;;  %s1862_s9 = smov [#allocation2]   ;;  %s1814_s13 = scalar_lea.hbm %s2716_s1, 1024 }
   0x2   :  { %s17_s10 = sshll.u32 %s1862_s9, 4  ;;  %p1815_p0 = scmp.ne.s32.totalorder %s2716_s1, %s1814_s13  ;;  %s18_s10 = int_to_ptr.vmem [resolvable:$true] %s17_s10 }
   0x3   :  { %p1818_p1 = scmp.lt.u32.totalorder %s1814_s13, %s2716_s1 }
   0x5   :  { %p1820_p2 = pnand %p1818_p1, %p1815_p0 }
   0x7   :  { %1823 = shalt.err (!%p1820_p2)
}
   0x8   :  { %s1824_s18 = scalar_lea.vmem %s18_s10, 1024  ;;  %p1829_p4 = scmp.lt.s32.totalorder %s18_s10, %s18_s10 }
   0x9   :  { %p1825_p3 = scmp.ne.s32.totalorder %s18_s10, %s1824_s18  ;;  %p1830_p5 = scmp.lt.s32.totalorder %s1824_s18, %s1824_s18 }
   0xb   :  { %p1831_p6 = por %p1830_p5, %p1829_p4 }
   0xd   :  { %p1832_p7 = pnand %p1831_p6, %p1825_p3 }
   0xf   :  { %1835 = shalt.err (!%p1832_p7)
}
  0x10   :  { %20 = dma.hbm_to_vmem [thread:$0]  %s2716_s1, 1024, %s18_s10, [#allocation3]  }
  0x11   :  { %1858 = dma.done.wait [#allocation3], 1024  }
  0x12   :  { %1859 = vsyncadd [#allocation3], 4294966272  ;;  %v1863_v0 = vmov 0.0   ;;  %v26_v1 = vld [vmem:[#allocation2] sm:$0xff]  ;;  %vm57_vm0 = vcmask 1043456   ;;  %v27_v2 = vld [vmem:[#allocation2 + $0x8] sm:$0xff] }
  0x13   :  { %154 = vmatprep.mubr.f32.mxu0 %v1863_v0  ;;  %231 = vmatprep.mubr.f32.mxu1 %v1863_v0  ;;  %v42_v3 = vcombine.high %v26_v1, %v26_v1  ;;  %v43_v4 = vcombine.high %v27_v2, %v27_v2  ;;  %v28_v5 = vld [vmem:[#allocation2 + $0x10] sm:$0xff]  ;;  %v29_v6 = vld [vmem:[#allocation2 + $0x18] sm:$0xff]  ;;  %v24_v7 = vld [vmem:[%s2715_s0] sm:$0xff]  ;;  %vm50_vm1 = vcmask 31744   ;;  %v1864_v24 = vmov 0  }
  0x14   :  { %v44_v8 = vcombine.high %v28_v5, %v28_v5  ;;  %v45_v9 = vcombine.high %v29_v6, %v29_v6  ;;  %v30_v10 = vld [vmem:[#allocation2 + $0x20] sm:$0xff]  ;;  %v31_v11 = vld [vmem:[#allocation2 + $0x28] sm:$0xff]  ;;  %v32_v15 = vld [vmem:[#allocation2 + $0x30] sm:$0xff]  ;;  %vm2719_vm5 = vcmask 1041408   ;;  %vm2718_vm12 = vcmask 1044480  }
  0x15   :  { %1656 = vmatprep.subr.msk.mxu0 %vm57_vm0, %v42_v3  ;;  %1660 = vmatprep.subr.msk.mxu1 %vm57_vm0, %v43_v4  ;;  %v25_v12 = vld [vmem:[%s2715_s0 + $0x8] sm:$0x1]  ;;  %v46_v13 = vcombine.high %v30_v10, %v30_v10  ;;  %v47_v14 = vcombine.high %v31_v11, %v31_v11  ;;  %v33_v16 = vld [vmem:[#allocation2 + $0x38] sm:$0xff]  ;;  %v48_v17 = vcombine.high %v32_v15, %v32_v15  ;;  %s1865_s0 = smov [#allocation5]  }
  0x16   :  { %1657 = vmatpush1.msk.msra.mxu0 %vm57_vm0, %v26_v1  ;;  %1661 = vmatpush1.msk.msra.mxu1 %vm57_vm0, %v27_v2  ;;  %v49_v18 = vcombine.high %v33_v16, %v33_v16  ;;  %s1644_s24 = sshll.u32 %s1865_s0, 4  ;;  %s1645_s24 = int_to_ptr.vmem [resolvable:$true] %s1644_s24 }
  0x17   :  { %1658 = vmatmul.mubr.msk.f32.vlgmr.msra.gmra.mrb[0].mxu0 %vm50_vm1, %v24_v7  ;;  %1662 = vmatmul.mubr.msk.f32.vlgmr.msra.gmra.mrb[0].mxu1 %vm50_vm1, %v24_v7  ;;  %s1836_s25 = scalar_lea.vmem %s1645_s24, 4096  ;;  %p1841_p9 = scmp.lt.s32.totalorder %s1645_s24, %s1645_s24 }
  0x18   :  { %1664 = vmatprep.subr.msk.mxu0 %vm57_vm0, %v44_v8  ;;  %1668 = vmatprep.subr.msk.mxu1 %vm57_vm0, %v45_v9  ;;  %p1837_p8 = scmp.ne.s32.totalorder %s1645_s24, %s1836_s25  ;;  %p1842_p10 = scmp.lt.s32.totalorder %s1836_s25, %s1836_s25 }
  0x19   :  { %1665 = vmatpush1.msk.msra.mxu0 %vm57_vm0, %v28_v5  ;;  %1669 = vmatpush1.msk.msra.mxu1 %vm57_vm0, %v29_v6 }
  0x1a   :  { %160 = vmatprep.mubr.f32.mxu0 %v1863_v0  ;;  %237 = vmatprep.mubr.f32.mxu1 %v1863_v0  ;;  %p1843_p11 = por %p1842_p10, %p1841_p9 }
  0x1b   :  { %1659 = vmatmul.mubr.msk.f32.gmra.mrb[2].mxu0 %vm50_vm1, %v25_v12  ;;  %1663 = vmatmul.mubr.msk.f32.gmra.mrb[2].mxu1 %vm50_vm1, %v25_v12 }
  0x1c   :  { %308 = vmatprep.mubr.f32.mxu0 %v1863_v0  ;;  %385 = vmatprep.mubr.f32.mxu1 %v1863_v0  ;;  %p1844_p12 = pnand %p1843_p11, %p1837_p8 }
  0x1d   :  { %1672 = vmatprep.subr.msk.mxu0 %vm57_vm0, %v46_v13  ;;  %1676 = vmatprep.subr.msk.mxu1 %vm57_vm0, %v47_v14 }
  0x1f   :  { %1666 = vmatmul.mubr.msk.f32.vlgmr.msra.gmra.mrb[4].mxu0 %vm50_vm1, %v24_v7  ;;  %1670 = vmatmul.mubr.msk.f32.vlgmr.msra.gmra.mrb[4].mxu1 %vm50_vm1, %v24_v7 }
  0x20   :  { %1673 = vmatpush1.msk.msra.mxu0 %vm57_vm0, %v30_v10  ;;  %1677 = vmatpush1.msk.msra.mxu1 %vm57_vm0, %v31_v11 }
  0x21   :  { %314 = vmatprep.mubr.f32.mxu0 %v1863_v0  ;;  %391 = vmatprep.mubr.f32.mxu1 %v1863_v0 }
  0x22   :  { %1680 = vmatprep.subr.msk.mxu0 %vm57_vm0, %v48_v17  ;;  %1684 = vmatprep.subr.msk.mxu1 %vm57_vm0, %v49_v18 }
  0x23   :  { %1667 = vmatmul.mubr.msk.f32.gmra.mrb[6].mxu0 %vm50_vm1, %v25_v12  ;;  %1671 = vmatmul.mubr.msk.f32.gmra.mrb[6].mxu1 %vm50_vm1, %v25_v12 }
  0x24   :  { %462 = vmatprep.mubr.f32.mxu0 %v1863_v0  ;;  %539 = vmatprep.mubr.f32.mxu1 %v1863_v0 }
  0x27   :  { %1674 = vmatmul.mubr.msk.f32.vlgmr.msra.gmra.mrb[8].mxu0 %vm50_vm1, %v24_v7  ;;  %1678 = vmatmul.mubr.msk.f32.vlgmr.msra.gmra.mrb[8].mxu1 %vm50_vm1, %v24_v7 }
  0x28   :  { %1681 = vmatpush1.msk.msra.mxu0 %vm57_vm0, %v32_v15  ;;  %1685 = vmatpush1.msk.msra.mxu1 %vm57_vm0, %v33_v16  ;;  %vm1573_vm0 = vcmask 1042432  }
  0x29   :  { %468 = vmatprep.mubr.f32.mxu0 %v1863_v0  ;;  %545 = vmatprep.mubr.f32.mxu1 %v1863_v0 }
  0x2b   :  { %1675 = vmatmul.mubr.msk.f32.gmra.mrb[10].mxu0 %vm50_vm1, %v25_v12  ;;  %1679 = vmatmul.mubr.msk.f32.gmra.mrb[10].mxu1 %vm50_vm1, %v25_v12 }
  0x2c   :  { %616 = vmatprep.mubr.f32.mxu0 %v1863_v0  ;;  %693 = vmatprep.mubr.f32.mxu1 %v1863_v0 }
  0x2f   :  { %1682 = vmatmul.mubr.msk.f32.vlgmr.msra.gmra.mrb[12].mxu0 %vm50_vm1, %v24_v7  ;;  %1686 = vmatmul.mubr.msk.f32.vlgmr.msra.gmra.mrb[12].mxu1 %vm50_vm1, %v24_v7 }
  0x30   :  { %622 = vmatprep.mubr.f32.mxu0 %v1863_v0  ;;  %699 = vmatprep.mubr.f32.mxu1 %v1863_v0 }
  0x33   :  { %1683 = vmatmul.mubr.msk.f32.gmra.mrb[14].mxu0 %vm50_vm1, %v25_v12  ;;  %1687 = vmatmul.mubr.msk.f32.gmra.mrb[14].mxu1 %vm50_vm1, %v25_v12 }
  0xea   :  { %v1949_v19 = vpop.f32.mrb[0].mxu0  ;;  %v1951_v20 = vpop.f32.mrb[0].mxu1 }
  0xeb   :  { %vm706_vm2 = vcmp.gt.f32.partialorder %v1949_v19, 0.0  ;;  %vm708_vm3 = vcmp.gt.f32.partialorder %v1951_v20, 0.0  ;;  %v1955_v21 = vpop.f32.mrb[1].mxu0  ;;  %v1957_v22 = vpop.f32.mrb[1].mxu1 }
  0xec   :  { %v738_v23 = vsel %vm706_vm2, %v1949_v19, 1.0  ;;  %v1253_v25 = vsel %vm706_vm2, 1, %v1864_v24  ;;  %v740_v26 = vsel %vm708_vm3, %v1951_v20, 1.0  ;;  %v1255_v27 = vsel %vm708_vm3, 1, %v1864_v24 }
  0xed   :  { %1750 = vrcp.f32 %v738_v23  ;;  %v1285_v28 = vrot.slane %v1253_v25, 6  ;;  %vm707_vm4 = vcmp.gt.f32.partialorder %v1955_v21, 0.0  ;;  %vm709_vm6 = vcmp.gt.f32.partialorder %v1957_v22, 0.0 }
  0xee   :  { %1752 = vrcp.f32 %v740_v26  ;;  %v739_v29 = vsel %vm707_vm4, %v1955_v21, 1.0  ;;  %v1254_v30 = vsel %vm707_vm4, 1, %v1864_v24  ;;  %v162_v31 = vpop.f32.mrb[2].mxu0  ;;  %v239_v32 = vpop.f32.mrb[2].mxu1  ;;  %v1291_v33 = vrot.slane %v1255_v27, 6 }
  0xef   :  { %1754 = vrcp.f32 %v739_v29  ;;  %v1288_v34 = vrot.slane %v1254_v30, 6  ;;  %v741_v35 = vsel %vm709_vm6, %v1957_v22, 1.0  ;;  %v164_v36 = vpop.f32.mrb[3].mxu0  ;;  %v241_v37 = vpop.f32.mrb[3].mxu1  ;;  %v1256_v38 = vsel %vm709_vm6, 1, %v1864_v24 }
  0xf0   :  { %1756 = vrcp.f32 %v741_v35  ;;  %vm722_vm7 = vcmp.gt.f32.partialorder %v162_v31, 0.0  ;;  %vm724_vm8 = vcmp.gt.f32.partialorder %v239_v32, 0.0  ;;  %vm723_vm9 = vcmp.gt.f32.partialorder %v164_v36, 0.0 }
  0xf1   :  { %v754_v39 = vsel %vm722_vm7, %v162_v31, 1.0  ;;  %v1269_v40 = vsel %vm722_vm7, 1, %v1864_v24  ;;  %v756_v41 = vsel %vm724_vm8, %v239_v32, 1.0  ;;  %v1271_v42 = vsel %vm724_vm8, 1, %v1864_v24 }
  0xf2   :  { %1758 = vrcp.f32 %v754_v39  ;;  %v1286_v43 = vrot.slane %v1269_v40, 6  ;;  %v1292_v44 = vrot.slane %v1271_v42, 6  ;;  %v1971_v45 = vpop.f32.mrb[4].mxu0  ;;  %v1973_v46 = vpop.f32.mrb[4].mxu1  ;;  %v755_v47 = vsel %vm723_vm9, %v164_v36, 1.0 }
  0xf3   :  { %1760 = vrcp.f32 %v756_v41  ;;  %v1270_v48 = vsel %vm723_vm9, 1, %v1864_v24  ;;  %vm725_vm10 = vcmp.gt.f32.partialorder %v241_v37, 0.0  ;;  %v1976_v49 = vpop.f32.mrb[5].mxu0  ;;  %v1978_v50 = vpop.f32.mrb[5].mxu1  ;;  %v1294_v54 = vrot.slane %v1256_v38, 6 }
  0xf4   :  { %v1981_v51 = vsel %vm2719_vm5, %v1285_v28, %v1286_v43  ;;  %v1984_v52 = vsel %vm2719_vm5, %v1291_v33, %v1292_v44  ;;  %1762 = vrcp.f32 %v755_v47  ;;  %v1289_v53 = vrot.slane %v1270_v48, 6 }
  0xf5   :  { %v757_v55 = vsel %vm725_vm10, %v241_v37, 1.0  ;;  %v1272_v56 = vsel %vm725_vm10, 1, %v1864_v24  ;;  %vm710_vm11 = vcmp.gt.f32.partialorder %v1971_v45, 0.0  ;;  %vm712_vm13 = vcmp.gt.f32.partialorder %v1973_v46, 0.0 }
  0xf6   :  { %v1988_v57 = vsel %vm2719_vm5, %v1288_v34, %v1289_v53  ;;  %1764 = vrcp.f32 %v757_v55  ;;  %v1295_v58 = vrot.slane %v1272_v56, 6  ;;  %v1991_v59 = vpop.f32.mrb[6].mxu0  ;;  %v1993_v60 = vpop.f32.mrb[6].mxu1  ;;  %v742_v3 = vsel %vm710_vm11, %v1971_v45, 1.0 }
  0xf7   :  { %v1751_v61 = vpop.eup %1750  ;;  %v1995_v62 = vpop.f32.mrb[7].mxu0  ;;  %1766 = vrcp.f32 %v742_v3  ;;  %v2015_v10 = vsel %vm710_vm11, 1, %v1864_v24  ;;  %v2024_v26 = vsel %vm712_vm13, %v1973_v46, 1.0  ;;  %v2029_v27 = vsel %vm712_vm13, 1, %v1864_v24 }
  0xf8   :  { %v1997_v63 = vpop.f32.mrb[7].mxu1  ;;  %v1753_v1 = vpop.eup %1752  ;;  %v2000_v2 = vsel %vm2719_vm5, %v1294_v54, %v1295_v58  ;;  %v867_v8 = vrot.slane %v1751_v61, 6  ;;  %v997_v9 = vrot.slane %v1751_v61, 3  ;;  %vm1333_vm14 = vcmp.ne.s32.totalorder %v1981_v51, 0 }
  0xf9   :  { %v1755_v4 = vpop.eup %1754  ;;  %v873_v14 = vrot.slane %v1753_v1, 6  ;;  %v1003_v15 = vrot.slane %v1753_v1, 3  ;;  %vm711_vm15 = vcmp.gt.f32.partialorder %v1976_v49, 0.0  ;;  %vm1335_vm1 = vcmp.ne.s32.totalorder %v1984_v52, 0 }
  0xfa   :  { %v2005_v5 = vpop.eup %1756  ;;  %v2008_v6 = vpop.f32.mrb[8].mxu0  ;;  %v870_v16 = vrot.slane %v1755_v4, 6  ;;  %v1000_v17 = vrot.slane %v1755_v4, 3  ;;  %1768 = vrcp.f32 %v2024_v26  ;;  %vm1590_vm3 = vcmask 1045504  }
  0xfb   :  { %v2010_v7 = vpop.f32.mrb[8].mxu1  ;;  %v2017_v11 = vpop.f32.mrb[9].mxu0  ;;  %v876_v29 = vrot.slane %v2005_v5, 6  ;;  %v1006_v30 = vrot.slane %v2005_v5, 3  ;;  %vm713_vm4 = vcmp.gt.f32.partialorder %v1978_v50, 0.0  ;;  %vm1334_vm7 = vcmp.ne.s32.totalorder %v1988_v57, 0 }
  0xfc   :  { %v2019_v12 = vpop.f32.mrb[9].mxu1  ;;  %v1759_v13 = vpop.eup %1758  ;;  %v743_v26 = vsel %vm711_vm15, %v1976_v49, 1.0  ;;  %vm726_vm9 = vcmp.gt.f32.partialorder %v1991_v59, 0.0 }
  0xfd   :  { %v1761_v18 = vpop.eup %1760  ;;  %v868_v23 = vrot.slane %v1759_v13, 6  ;;  %v998_v25 = vrot.slane %v1759_v13, 3  ;;  %1770 = vrcp.f32 %v743_v26  ;;  %v1273_v26 = vsel %vm726_vm9, 1, %v1864_v24 }
  0xfe   :  { %v1763_v28 = vpop.eup %1762  ;;  %v874_v31 = vrot.slane %v1761_v18, 6  ;;  %v1004_v32 = vrot.slane %v1761_v18, 3  ;;  %v2033_v33 = vpop.f32.mrb[10].mxu0 }
  0xff   :  { %v2035_v34 = vpop.f32.mrb[10].mxu1  ;;  %v869_v35 = vsel %vm2719_vm5, %v867_v8, %v868_v23  ;;  %v999_v36 = vsel %vm2718_vm12, %v997_v9, %v998_v25  ;;  %v871_v37 = vrot.slane %v1763_v28, 6  ;;  %v1001_v38 = vrot.slane %v1763_v28, 3  ;;  %v2039_v39 = vpop.f32.mrb[11].mxu0 }
 0x100   :  { %v2041_v40 = vpop.f32.mrb[11].mxu1  ;;  %v1765_v41 = vpop.eup %1764  ;;  %v931_v42 = vmul.f32 %v869_v35, %v1949_v19  ;;  %v1061_v43 = vmul.f32 %v999_v36, %v1949_v19  ;;  %v875_v44 = vsel %vm2719_vm5, %v873_v14, %v874_v31  ;;  %v1005_v47 = vsel %vm2718_vm12, %v1003_v15, %v1004_v32 }
 0x101   :  { %v933_v48 = vmul.f32 %v875_v44, %v1951_v20  ;;  %v1063_v53 = vmul.f32 %v1005_v47, %v1951_v20  ;;  %v872_v54 = vsel %vm2719_vm5, %v870_v16, %v871_v37  ;;  %v1002_v55 = vsel %vm2718_vm12, %v1000_v17, %v1001_v38  ;;  %v2061_v18 = vpop.eup %1766 }
 0x102   :  { %v947_v56 = vmul.f32 2.0, %v931_v42  ;;  %v1077_v58 = vmul.f32 2.0, %v1061_v43  ;;  %v932_v61 = vmul.f32 %v872_v54, %v1955_v21  ;;  %v1062_v1 = vmul.f32 %v1002_v55, %v1955_v21  ;;  %v2053_v3 = vpop.f32.mrb[12].mxu0  ;;  %v2055_v19 = vpop.f32.mrb[12].mxu1 }
 0x103   :  { %v949_v4 = vmul.f32 2.0, %v933_v48  ;;  %v1079_v5 = vmul.f32 2.0, %v1063_v53  ;;  %v877_v8 = vrot.slane %v1765_v41, 6  ;;  %v1007_v9 = vrot.slane %v1765_v41, 3  ;;  %v2057_v13 = vpop.f32.mrb[13].mxu0  ;;  %v2059_v20 = vpop.f32.mrb[13].mxu1 }
 0x104   :  { %v964_v14 = vmul.f32 0.06666667, %v947_v56  ;;  %v1093_v15 = vmul.f32 0.06666667, %v1077_v58  ;;  %v948_v16 = vmul.f32 2.0, %v932_v61  ;;  %v1078_v17 = vmul.f32 2.0, %v1062_v1 }
 0x105   :  { %v966_v23 = vmul.f32 0.06666667, %v949_v4  ;;  %v1095_v21 = vmul.f32 0.06666667, %v1079_v5  ;;  %v878_v25 = vsel %vm2719_vm5, %v876_v29, %v877_v8  ;;  %v1008_v28 = vsel %vm2718_vm12, %v1006_v30, %v1007_v9 }
 0x106   :  { %v2065_v31 = vadd.f32 -1.0, %v964_v14  ;;  %v1704_v32 = vadd.f32 -1.0, %v1093_v15  ;;  %v965_v35 = vmul.f32 0.06666667, %v948_v16  ;;  %v1094_v36 = vmul.f32 0.06666667, %v1078_v17 }
 0x107   :  { %v2068_v37 = vadd.f32 -1.0, %v1095_v21  ;;  %v934_v38 = vmul.f32 %v878_v25, %v1957_v22  ;;  %v1064_v41 = vmul.f32 %v1008_v28, %v1957_v22  ;;  %v1297_v42 = vrot.slane %v2015_v10, 6  ;;  %v2073_v43 = vpop.f32.mrb[14].mxu0  ;;  %v2075_v29 = vpop.f32.mrb[14].mxu1 }
 0x108   :  { %v1157_v30 = vand.u32 2147483647, %v1704_v32  ;;  %v2077_v44 = vadd.f32 -1.0, %v966_v23  ;;  %v2079_v47 = vadd.f32 -1.0, %v965_v35  ;;  %v2084_v53 = vadd.f32 -1.0, %v1094_v36  ;;  %v2090_v56 = vpop.f32.mrb[15].mxu0 }
 0x109   :  { %v1159_v48 = vand.u32 2147483647, %v2068_v37  ;;  %v1303_v22 = vrot.slane %v2029_v27, 6  ;;  %v1125_v54 = vand.u32 2147483647, %v2065_v31  ;;  %v950_v55 = vmul.f32 2.0, %v934_v38 }
 0x10a   :  { %vm1173_vm2 = vcmp.le.f32.partialorder %v1157_v30, 1.0  ;;  %v1158_v61 = vand.u32 2147483647, %v2084_v53  ;;  %v2098_v1 = vpop.f32.mrb[15].mxu1  ;;  %v1127_v5 = vand.u32 2147483647, %v2077_v44 }
 0x10b   :  { %v1189_v58 = vsel %vm1173_vm2, 1, %v1864_v24  ;;  %vm1175_vm6 = vcmp.le.f32.partialorder %v1159_v48, 1.0  ;;  %v1126_v9 = vand.u32 2147483647, %v2079_v47  ;;  %v967_v15 = vmul.f32 0.06666667, %v950_v55 }
 0x10c   :  { %v1205_v4 = vrot.slane %v1189_v58, 3  ;;  %v1191_v8 = vsel %vm1175_vm6, 1, %v1864_v24  ;;  %vm1174_vm8 = vcmp.le.f32.partialorder %v1158_v61, 1.0  ;;  %v1080_v16 = vmul.f32 2.0, %v1064_v41 }
 0x10d   :  { %v1207_v14 = vrot.slane %v1191_v8, 3  ;;  %vm1141_vm10 = vcmp.le.f32.partialorder %v1125_v54, 1.0  ;;  %v1397_v17 = vrot.slane %v1704_v32, 3  ;;  %v1190_v23 = vsel %vm1174_vm8, 1, %v1864_v24 }
 0x10e   :  { %vm1221_vm11 = vcmp.ne.s32.totalorder %v1205_v4, 0  ;;  %v1206_v25 = vrot.slane %v1190_v23, 3  ;;  %v2109_v28 = vadd.f32 -1.0, %v967_v15  ;;  %v1096_v35 = vmul.f32 0.06666667, %v1080_v16  ;;  %v2149_v4 = vpop.eup %1768 }
 0x10f   :  { %vm1237_vm13 = vmand %vm1141_vm10, %vm1221_vm11  ;;  %vm2105_vm2 = vcmp.ne.s32.totalorder %v1207_v14, 0  ;;  %vm728_vm6 = vcmp.gt.f32.partialorder %v1993_v60, 0.0  ;;  %vm1143_vm5 = vcmp.le.f32.partialorder %v1127_v5, 1.0  ;;  %v1399_v32 = vrot.slane %v2068_v37, 3 }
 0x110   :  { %vm2114_vm12 = vmand %vm1237_vm13, %vm1333_vm14  ;;  %vm2119_vm8 = vcmp.le.f32.partialorder %v1126_v9, 1.0  ;;  %v2126_v41 = vsel %vm711_vm15, 1, %v1864_v24  ;;  %vm2138_vm10 = vcmp.ne.s32.totalorder %v1206_v25, 0  ;;  %v1398_v58 = vrot.slane %v2084_v53, 3 }
 0x111   :  { %v1365_v51 = vsel %vm2114_vm12, %v2065_v31, 0.0  ;;  %v1429_v30 = vsel %vm2114_vm12, %v1397_v17, 0.0  ;;  %v1720_v37 = vsel %vm2114_vm12, 1.0, %v1863_v0  ;;  %vm1239_vm14 = vmand %vm1143_vm5, %vm2105_vm2  ;;  %v1707_v61 = vadd.f32 -1.0, %v1096_v35 }
 0x112   :  { %v1493_v54 = vrot.slane %v1429_v30, 5  ;;  %v1541_v55 = vrot.slane %v1720_v37, 2  ;;  %vm2144_vm15 = vmand %vm1239_vm14, %vm1335_vm1  ;;  %v1128_v53 = vand.u32 2147483647, %v2109_v28  ;;  %v745_v16 = vsel %vm713_vm4, %v1978_v50, 1.0 }
 0x113   :  { %v1367_v5 = vsel %vm2144_vm15, %v2077_v44, 0.0  ;;  %v1431_v8 = vsel %vm2144_vm15, %v1399_v32, 0.0  ;;  %v1722_v52 = vsel %vm2144_vm15, 1.0, %v1863_v0  ;;  %vm1238_vm5 = vmand %vm2119_vm8, %vm2138_vm10  ;;  %vm1336_vm1 = vcmp.ne.s32.totalorder %v2000_v2, 0 }
 0x114   :  { %v1574_v9 = vsel %vm1573_vm0, %v1365_v51, %v1493_v54  ;;  %1623 = vst [vmem:[#allocation5 + $0x80] sm:$0x1] %v1541_v55  ;;  %v1495_v14 = vrot.slane %v1431_v8, 5  ;;  %v1543_v15 = vrot.slane %v1722_v52, 2  ;;  %vm2167_vm12 = vmand %vm1238_vm5, %vm1334_vm7  ;;  %v1160_v32 = vand.u32 2147483647, %v1707_v61 }
 0x115   :  { %v1591_v17 = vsel %vm1590_vm3, %v1574_v9, %v1541_v55  ;;  %v1366_v23 = vsel %vm2167_vm12, %v2079_v47, 0.0  ;;  %v1430_v21 = vsel %vm2167_vm12, %v1398_v58, 0.0  ;;  %v1721_v57 = vsel %vm2167_vm12, 1.0, %v1863_v0 }
 0x116   :  { %1607 = vst [vmem:[#allocation5] sm:$0xff] %v1591_v17  ;;  %v1576_v25 = vsel %vm1573_vm0, %v1367_v5, %v1495_v14  ;;  %1625 = vst [vmem:[#allocation5 + $0x90] sm:$0x1] %v1543_v15  ;;  %v1494_v35 = vrot.slane %v1430_v21, 5  ;;  %v1542_v36 = vrot.slane %v1721_v57, 2  ;;  %vm2186_vm7 = vcmp.le.f32.partialorder %v1128_v53, 1.0 }
 0x117   :  { %v1593_v38 = vsel %vm1590_vm3, %v1576_v25, %v1543_v15  ;;  %v1300_v51 = vrot.slane %v2126_v41, 6  ;;  %vm1176_vm11 = vcmp.le.f32.partialorder %v1160_v32, 1.0  ;;  %1772 = vrcp.f32 %v745_v16 }
 0x118   :  { %1609 = vst [vmem:[#allocation5 + $0x10] sm:$0xff] %v1593_v38  ;;  %v1575_v30 = vsel %vm1573_vm0, %v1366_v23, %v1494_v35  ;;  %1624 = vst [vmem:[#allocation5 + $0x88] sm:$0x1] %v1542_v36  ;;  %v758_v37 = vsel %vm726_vm9, %v1991_v59, 1.0  ;;  %v1192_v54 = vsel %vm1176_vm11, 1, %v1864_v24  ;;  %v1298_v55 = vrot.slane %v1273_v26, 6 }
 0x119   :  { %v1592_v48 = vsel %vm1590_vm3, %v1575_v30, %v1542_v36  ;;  %1774 = vrcp.f32 %v758_v37  ;;  %v1208_v41 = vrot.slane %v1192_v54, 3  ;;  %v760_v31 = vsel %vm728_vm6, %v1993_v60, 1.0 }
 0x11a   :  { %1608 = vst [vmem:[#allocation5 + $0x8] sm:$0xff] %v1592_v48  ;;  %v1275_v58 = vsel %vm728_vm6, 1, %v1864_v24  ;;  %1776 = vrcp.f32 %v760_v31  ;;  %vm727_vm13 = vcmp.gt.f32.partialorder %v1995_v62, 0.0  ;;  %vm729_vm2 = vcmp.gt.f32.partialorder %v1997_v63, 0.0 }
 0x11b   :  { %v1304_v5 = vrot.slane %v1275_v58, 6  ;;  %vm1224_vm8 = vcmp.ne.s32.totalorder %v1208_v41, 0  ;;  %vm2734_vm9 = vcmask 1041408   ;;  %v759_v8 = vsel %vm727_vm13, %v1995_v62, 1.0 }
 0x11c   :  { %v2211_v59 = vsel %vm2734_vm9, %v1297_v42, %v1298_v55  ;;  %v1274_v52 = vsel %vm727_vm13, 1, %v1864_v24  ;;  %vm1240_vm14 = vmand %vm2186_vm7, %vm1224_vm8  ;;  %v1400_v60 = vrot.slane %v1707_v61, 3  ;;  %1778 = vrcp.f32 %v759_v8 }
 0x11d   :  { %vm2735_vm6 = vmmov %vm2734_vm9  ;;  %v1301_v9 = vrot.slane %v1274_v52, 6  ;;  %v1260_v62 = vsel %vm713_vm4, 1, %v1864_v24  ;;  %v761_v42 = vsel %vm729_vm2, %v1997_v63, 1.0  ;;  %v1276_v61 = vsel %vm729_vm2, 1, %v1864_v24  ;;  %v1771_v63 = vpop.eup %1770 }
 0x11e   :  { %v2220_v53 = vsel %vm2735_vm6, %v1303_v22, %v1304_v5  ;;  %vm2224_vm10 = vmand %vm1240_vm14, %vm1336_vm1  ;;  %1780 = vrcp.f32 %v761_v42  ;;  %v1306_v16 = vrot.slane %v1260_v62, 6  ;;  %v1307_v17 = vrot.slane %v1276_v61, 6 }
 0x11f   :  { %v1368_v27 = vsel %vm2224_vm10, %v2109_v28, 0.0  ;;  %v1432_v22 = vsel %vm2224_vm10, %v1400_v60, 0.0  ;;  %v1723_v2 = vsel %vm2224_vm10, 1.0, %v1863_v0  ;;  %vm2738_vm15 = vmmov %vm2735_vm6  ;;  %v879_v28 = vrot.slane %v2061_v18, 6 }
 0x120   :  { %v2242_v14 = vsel %vm2738_vm15, %v1300_v51, %v1301_v9  ;;  %v1496_v15 = vrot.slane %v1432_v22, 5  ;;  %v1544_v44 = vrot.slane %v1723_v2, 2  ;;  %vm714_vm4 = vcmp.gt.f32.partialorder %v2008_v6, 0.0  ;;  %vm2739_vm5 = vmmov %vm2735_vm6 }
 0x121   :  { %v1773_v23 = vpop.eup %1772  ;;  %v1009_v35 = vrot.slane %v2061_v18, 3  ;;  %v885_v36 = vrot.slane %v2149_v4, 6  ;;  %v2251_v32 = vsel %vm2739_vm5, %v1306_v16, %v1307_v17  ;;  %v1015_v38 = vrot.slane %v2149_v4, 3  ;;  %vm2740_vm1 = vmmov %vm2739_vm5 }
 0x122   :  { %v1577_v21 = vsel %vm1573_vm0, %v1368_v27, %v1496_v15  ;;  %1626 = vst [vmem:[#allocation5 + $0x98] sm:$0x1] %v1544_v44  ;;  %v882_v47 = vrot.slane %v1771_v63, 6  ;;  %v1012_v48 = vrot.slane %v1771_v63, 3  ;;  %v746_v54 = vsel %vm714_vm4, %v2008_v6, 1.0  ;;  %vm2742_vm11 = vmmov %vm2740_vm1 }
 0x123   :  { %v1775_v57 = vpop.eup %1774  ;;  %v1594_v25 = vsel %vm1590_vm3, %v1577_v21, %v1544_v44  ;;  %v2256_v26 = vsel %vm714_vm4, 1, %v1864_v24  ;;  %vm716_vm12 = vcmp.gt.f32.partialorder %v2010_v7, 0.0  ;;  %vm2741_vm7 = vcmask 1044480   ;;  %vm2744_vm2 = vmmov %vm2740_vm1 }
 0x124   :  { %1610 = vst [vmem:[#allocation5 + $0x18] sm:$0xff] %v1594_v25  ;;  %v880_v51 = vrot.slane %v1775_v57, 6  ;;  %v1010_v30 = vrot.slane %v1775_v57, 3  ;;  %v1777_v37 = vpop.eup %1776  ;;  %v888_v4 = vrot.slane %v1773_v23, 6  ;;  %v1018_v5 = vrot.slane %v1773_v23, 3  ;;  %vm2743_vm13 = vmmov %vm2741_vm7 }
 0x125   :  { %v886_v55 = vrot.slane %v1777_v37, 6  ;;  %v1016_v31 = vrot.slane %v1777_v37, 3  ;;  %vm2745_vm8 = vmmov %vm2741_vm7  ;;  %1782 = vrcp.f32 %v746_v54  ;;  %vm1337_vm9 = vcmp.ne.s32.totalorder %v2211_v59, 0 }
 0x126   :  { %v881_v18 = vsel %vm2740_vm1, %v879_v28, %v880_v51  ;;  %v1011_v41 = vsel %vm2741_vm7, %v1009_v35, %v1010_v30  ;;  %v1779_v58 = vpop.eup %1778  ;;  %vm2746_vm14 = vmmov %vm2740_vm1  ;;  %vm1339_vm15 = vcmp.ne.s32.totalorder %v2220_v53, 0  ;;  %vm715_vm4 = vcmp.gt.f32.partialorder %v2017_v11, 0.0 }
 0x127   :  { %v935_v8 = vmul.f32 %v881_v18, %v1971_v45  ;;  %v1065_v52 = vmul.f32 %v1011_v41, %v1971_v45  ;;  %v887_v60 = vsel %vm2742_vm11, %v885_v36, %v886_v55  ;;  %v1017_v9 = vsel %vm2743_vm13, %v1015_v38, %v1016_v31  ;;  %vm2747_vm6 = vmmov %vm2741_vm7 }
 0x128   :  { %v883_v10 = vrot.slane %v1779_v58, 6  ;;  %v1013_v62 = vrot.slane %v1779_v58, 3  ;;  %v937_v27 = vmul.f32 %v887_v60, %v1973_v46  ;;  %v1067_v22 = vmul.f32 %v1017_v9, %v1973_v46  ;;  %v1781_v2 = vpop.eup %1780 }
 0x129   :  { %v951_v42 = vmul.f32 2.0, %v935_v8  ;;  %v1081_v61 = vmul.f32 2.0, %v1065_v52  ;;  %v748_v45 = vsel %vm716_vm12, %v2010_v7, 1.0  ;;  %v889_v57 = vrot.slane %v1781_v2, 6 }
 0x12a   :  { %v884_v15 = vsel %vm2744_vm2, %v882_v47, %v883_v10  ;;  %v1014_v44 = vsel %vm2745_vm8, %v1012_v48, %v1013_v62  ;;  %v953_v17 = vmul.f32 2.0, %v937_v27  ;;  %v1083_v23 = vmul.f32 2.0, %v1067_v22 }
 0x12b   :  { %v968_v63 = vmul.f32 0.06666667, %v951_v42  ;;  %v1097_v16 = vmul.f32 0.06666667, %v1081_v61  ;;  %v936_v21 = vmul.f32 %v884_v15, %v1976_v49  ;;  %v1066_v28 = vmul.f32 %v1014_v44, %v1976_v49 }
 0x12c   :  { %v1019_v46 = vrot.slane %v1781_v2, 3  ;;  %v970_v36 = vmul.f32 0.06666667, %v953_v17  ;;  %v1099_v38 = vmul.f32 0.06666667, %v1083_v23  ;;  %v890_v30 = vsel %vm2746_vm14, %v888_v4, %v889_v57 }
 0x12d   :  { %v2274_v25 = vadd.f32 -1.0, %v968_v63  ;;  %v1708_v35 = vadd.f32 -1.0, %v1097_v16  ;;  %v952_v47 = vmul.f32 2.0, %v936_v21  ;;  %v1082_v51 = vmul.f32 2.0, %v1066_v28 }
 0x12e   :  { %v1020_v37 = vsel %vm2747_vm6, %v1018_v5, %v1019_v46  ;;  %v2280_v18 = vadd.f32 -1.0, %v970_v36  ;;  %v1309_v49 = vrot.slane %v2256_v26, 6  ;;  %v1710_v41 = vadd.f32 -1.0, %v1099_v38 }
 0x12f   :  { %v1129_v48 = vand.u32 2147483647, %v2274_v25  ;;  %v1161_v54 = vand.u32 2147483647, %v1708_v35  ;;  %v969_v55 = vmul.f32 0.06666667, %v952_v47  ;;  %v938_v58 = vmul.f32 %v890_v30, %v1978_v50 }
 0x130   :  { %v1098_v31 = vmul.f32 0.06666667, %v1082_v51  ;;  %v1068_v8 = vmul.f32 %v1020_v37, %v1978_v50  ;;  %1784 = vrcp.f32 %v748_v45  ;;  %v2289_v4 = vsel %vm716_vm12, 1, %v1864_v24  ;;  %v2299_v50 = vpop.eup %1782 }
 0x131   :  { %vm1177_vm10 = vcmp.le.f32.partialorder %v1161_v54, 1.0  ;;  %v1163_v52 = vand.u32 2147483647, %v1710_v41  ;;  %v2292_v60 = vadd.f32 -1.0, %v969_v55  ;;  %v1131_v10 = vand.u32 2147483647, %v2280_v18 }
 0x132   :  { %v1193_v5 = vsel %vm1177_vm10, 1, %v1864_v24  ;;  %v2296_v62 = vadd.f32 -1.0, %v1098_v31  ;;  %v954_v42 = vmul.f32 2.0, %v938_v58  ;;  %vm717_vm5 = vcmp.gt.f32.partialorder %v2019_v12, 0.0 }
 0x133   :  { %v1209_v9 = vrot.slane %v1193_v5, 3  ;;  %vm2301_vm1 = vcmp.le.f32.partialorder %v1129_v48, 1.0  ;;  %vm1179_vm12 = vcmp.le.f32.partialorder %v1163_v52, 1.0  ;;  %v1084_v27 = vmul.f32 2.0, %v1068_v8 }
 0x134   :  { %vm730_vm7 = vcmp.gt.f32.partialorder %v2033_v33, 0.0  ;;  %v1195_v22 = vsel %vm1179_vm12, 1, %v1864_v24  ;;  %v1130_v2 = vand.u32 2147483647, %v2292_v60  ;;  %v1162_v15 = vand.u32 2147483647, %v2296_v62 }
 0x135   :  { %vm1225_vm11 = vcmp.ne.s32.totalorder %v1209_v9, 0  ;;  %vm1338_vm13 = vcmp.ne.s32.totalorder %v2242_v14, 0  ;;  %v1401_v44 = vrot.slane %v1708_v35, 3  ;;  %v1211_v45 = vrot.slane %v1195_v22, 3 }
 0x136   :  { %vm1241_vm2 = vmand %vm2301_vm1, %vm1225_vm11  ;;  %v971_v63 = vmul.f32 0.06666667, %v954_v42  ;;  %v1100_v16 = vmul.f32 0.06666667, %v1084_v27  ;;  %vm1147_vm14 = vcmp.le.f32.partialorder %v1131_v10, 1.0  ;;  %v1403_v23 = vrot.slane %v1710_v41, 3 }
 0x137   :  { %vm2314_vm8 = vmand %vm1241_vm2, %vm1337_vm9  ;;  %vm1178_vm6 = vcmp.le.f32.partialorder %v1162_v15, 1.0  ;;  %v1315_v21 = vrot.slane %v2289_v4, 6  ;;  %vm1227_vm9 = vcmp.ne.s32.totalorder %v1211_v45, 0  ;;  %vm2336_vm12 = vcmp.le.f32.partialorder %v1130_v2, 1.0 }
 0x138   :  { %v1369_v28 = vsel %vm2314_vm8, %v2274_v25, 0.0  ;;  %v1433_v57 = vsel %vm2314_vm8, %v1401_v44, 0.0  ;;  %v1724_v59 = vsel %vm2314_vm8, 1.0, %v1863_v0  ;;  %vm1243_vm10 = vmand %vm1147_vm14, %vm1227_vm9  ;;  %v1194_v36 = vsel %vm1178_vm6, 1, %v1864_v24 }
 0x139   :  { %v1497_v46 = vrot.slane %v1433_v57, 5  ;;  %v1545_v35 = vrot.slane %v1724_v59, 2  ;;  %v2328_v38 = vadd.f32 -1.0, %v971_v63  ;;  %vm2332_vm1 = vmand %vm1243_vm10, %vm1339_vm15  ;;  %v1210_v51 = vrot.slane %v1194_v36, 3 }
 0x13a   :  { %v2340_v30 = vadd.f32 -1.0, %v1100_v16  ;;  %v747_v37 = vsel %vm715_vm4, %v2017_v11, 1.0  ;;  %v2345_v48 = vpop.eup %1784  ;;  %v1371_v53 = vsel %vm2332_vm1, %v2280_v18, 0.0  ;;  %v1435_v41 = vsel %vm2332_vm1, %v1403_v23, 0.0 }
 0x13b   :  { %v1578_v54 = vsel %vm1573_vm0, %v1369_v28, %v1497_v46  ;;  %1627 = vst [vmem:[#allocation5 + $0xa0] sm:$0x1] %v1545_v35  ;;  %v1726_v55 = vsel %vm2332_vm1, 1.0, %v1863_v0  ;;  %v1499_v58 = vrot.slane %v1435_v41, 5  ;;  %vm1226_vm15 = vcmp.ne.s32.totalorder %v1210_v51, 0 }
 0x13c   :  { %v1595_v31 = vsel %vm1590_vm3, %v1578_v54, %v1545_v35  ;;  %v1547_v8 = vrot.slane %v1726_v55, 2  ;;  %vm1242_vm11 = vmand %vm2336_vm12, %vm1226_vm15  ;;  %v1402_v5 = vrot.slane %v2296_v62, 3  ;;  %v1132_v18 = vand.u32 2147483647, %v2328_v38 }
 0x13d   :  { %1611 = vst [vmem:[#allocation5 + $0x20] sm:$0xff] %v1595_v31  ;;  %v1164_v52 = vand.u32 2147483647, %v2340_v30  ;;  %vm1340_vm2 = vcmp.ne.s32.totalorder %v2251_v32, 0  ;;  %1786 = vrcp.f32 %v747_v37  ;;  %v1580_v9 = vsel %vm1573_vm0, %v1371_v53, %v1499_v58  ;;  %vm2366_vm8 = vmand %vm1242_vm11, %vm1338_vm13 }
 0x13e   :  { %1629 = vst [vmem:[#allocation5 + $0xb0] sm:$0x1] %v1547_v8  ;;  %v1262_v62 = vsel %vm715_vm4, 1, %v1864_v24  ;;  %v749_v42 = vsel %vm717_vm5, %v2019_v12, 1.0  ;;  %v762_v61 = vsel %vm730_vm7, %v2033_v33, 1.0  ;;  %v1597_v27 = vsel %vm1590_vm3, %v1580_v9, %v1547_v8 }
 0x13f   :  { %v1370_v14 = vsel %vm2366_vm8, %v2292_v60, 0.0  ;;  %v1434_v22 = vsel %vm2366_vm8, %v1402_v5, 0.0  ;;  %v1725_v2 = vsel %vm2366_vm8, 1.0, %v1863_v0  ;;  %1613 = vst [vmem:[#allocation5 + $0x30] sm:$0xff] %v1597_v27  ;;  %vm1180_vm4 = vcmp.le.f32.partialorder %v1164_v52, 1.0 }
 0x140   :  { %v1498_v15 = vrot.slane %v1434_v22, 5  ;;  %v1546_v44 = vrot.slane %v1725_v2, 2  ;;  %v1404_v45 = vrot.slane %v2340_v30, 3  ;;  %vm2389_vm13 = vcmp.le.f32.partialorder %v1132_v18, 1.0 }
 0x141   :  { %v1196_v16 = vsel %vm1180_vm4, 1, %v1864_v24  ;;  %1788 = vrcp.f32 %v749_v42  ;;  %v1277_v60 = vsel %vm730_vm7, 1, %v1864_v24  ;;  %vm732_vm14 = vcmp.gt.f32.partialorder %v2035_v34, 0.0 }
 0x142   :  { %v1579_v17 = vsel %vm1573_vm0, %v1370_v14, %v1498_v15  ;;  %1628 = vst [vmem:[#allocation5 + $0xa8] sm:$0x1] %v1546_v44  ;;  %v1212_v23 = vrot.slane %v1196_v16, 3  ;;  %1790 = vrcp.f32 %v762_v61  ;;  %v1310_v28 = vrot.slane %v1277_v60, 6 }
 0x143   :  { %v1596_v57 = vsel %vm1590_vm3, %v1579_v17, %v1546_v44  ;;  %vm731_vm6 = vcmp.gt.f32.partialorder %v2039_v39, 0.0  ;;  %vm733_vm9 = vcmp.gt.f32.partialorder %v2041_v40, 0.0  ;;  %vm2760_vm1 = vcmask 1041408  }
 0x144   :  { %1612 = vst [vmem:[#allocation5 + $0x28] sm:$0xff] %v1596_v57  ;;  %vm1228_vm10 = vcmp.ne.s32.totalorder %v1212_v23, 0  ;;  %v2405_v33 = vsel %vm2760_vm1, %v1309_v49, %v1310_v28  ;;  %v764_v59 = vsel %vm732_vm14, %v2035_v34, 1.0  ;;  %v1279_v46 = vsel %vm732_vm14, 1, %v1864_v24  ;;  %vm2764_vm11 = vmmov %vm2760_vm1 }
 0x145   :  { %vm1244_vm7 = vmand %vm2389_vm13, %vm1228_vm10  ;;  %v1264_v35 = vsel %vm717_vm5, 1, %v1864_v24  ;;  %1792 = vrcp.f32 %v764_v59  ;;  %v1316_v36 = vrot.slane %v1279_v46, 6  ;;  %v763_v47 = vsel %vm731_vm6, %v2039_v39, 1.0 }
 0x146   :  { %vm2417_vm12 = vmand %vm1244_vm7, %vm1340_vm2  ;;  %1794 = vrcp.f32 %v763_v47  ;;  %v1278_v34 = vsel %vm731_vm6, 1, %v1864_v24  ;;  %v765_v49 = vsel %vm733_vm9, %v2041_v40, 1.0  ;;  %v1280_v25 = vsel %vm733_vm9, 1, %v1864_v24 }
 0x147   :  { %v1787_v51 = vpop.eup %1786  ;;  %v1372_v30 = vsel %vm2417_vm12, %v2328_v38, 0.0  ;;  %v1436_v39 = vsel %vm2417_vm12, %v1404_v45, 0.0  ;;  %v1727_v32 = vsel %vm2417_vm12, 1.0, %v1863_v0  ;;  %vm2763_vm5 = vmmov %vm2760_vm1  ;;  %v1312_v53 = vrot.slane %v1262_v62, 6 }
 0x148   :  { %v2435_v37 = vsel %vm2763_vm5, %v1315_v21, %v1316_v36  ;;  %v1500_v40 = vrot.slane %v1436_v39, 5  ;;  %v1548_v54 = vrot.slane %v1727_v32, 2  ;;  %v1313_v41 = vrot.slane %v1278_v34, 6  ;;  %vm2765_vm2 = vmmov %vm2760_vm1 }
 0x149   :  { %v1318_v55 = vrot.slane %v1264_v35, 6  ;;  %1796 = vrcp.f32 %v765_v49  ;;  %v1319_v31 = vrot.slane %v1280_v25, 6  ;;  %vm718_vm15 = vcmp.gt.f32.partialorder %v2053_v3, 0.0  ;;  %vm2766_vm4 = vmmov %vm2760_vm1 }
 0x14a   :  { %v1581_v38 = vsel %vm1573_vm0, %v1372_v30, %v1500_v40  ;;  %1630 = vst [vmem:[#allocation5 + $0xb8] sm:$0x1] %v1548_v54  ;;  %v2440_v58 = vsel %vm2764_vm11, %v1312_v53, %v1313_v41  ;;  %v750_v5 = vsel %vm718_vm15, %v2053_v3, 1.0  ;;  %v891_v52 = vrot.slane %v2299_v50, 6  ;;  %vm2768_vm14 = vmmov %vm2760_vm1 }
 0x14b   :  { %v1789_v8 = vpop.eup %1788  ;;  %v1598_v4 = vsel %vm1590_vm3, %v1581_v38, %v1548_v54  ;;  %v2444_v21 = vsel %vm2765_vm2, %v1318_v55, %v1319_v31  ;;  %v1021_v9 = vrot.slane %v2299_v50, 3  ;;  %v897_v10 = vrot.slane %v2345_v48, 6  ;;  %vm2770_vm9 = vmmov %vm2760_vm1 }
 0x14c   :  { %v1791_v18 = vpop.eup %1790  ;;  %1614 = vst [vmem:[#allocation5 + $0x38] sm:$0xff] %v1598_v4  ;;  %v1027_v62 = vrot.slane %v2345_v48, 3  ;;  %v894_v42 = vrot.slane %v1787_v51, 6  ;;  %v1024_v14 = vrot.slane %v1787_v51, 3  ;;  %1798 = vrcp.f32 %v750_v5  ;;  %vm2772_vm7 = vmmov %vm2765_vm2 }
 0x14d   :  { %v892_v61 = vrot.slane %v1791_v18, 6  ;;  %v1022_v27 = vrot.slane %v1791_v18, 3  ;;  %v2456_v22 = vsel %vm718_vm15, 1, %v1864_v24  ;;  %vm720_vm8 = vcmp.gt.f32.partialorder %v2055_v19, 0.0 }
 0x14e   :  { %v900_v15 = vrot.slane %v1789_v8, 6  ;;  %v1030_v44 = vrot.slane %v1789_v8, 3  ;;  %vm2767_vm13 = vcmask 1044480   ;;  %v1321_v57 = vrot.slane %v2456_v22, 6 }
 0x14f   :  { %v1793_v2 = vpop.eup %1792  ;;  %v893_v50 = vsel %vm2766_vm4, %v891_v52, %v892_v61  ;;  %v1023_v45 = vsel %vm2767_vm13, %v1021_v9, %v1022_v27  ;;  %v752_v59 = vsel %vm720_vm8, %v2055_v19, 1.0  ;;  %vm2769_vm6 = vmmov %vm2767_vm13  ;;  %vm1341_vm1 = vcmp.ne.s32.totalorder %v2405_v33, 0 }
 0x150   :  { %v1795_v48 = vpop.eup %1794  ;;  %v939_v63 = vmul.f32 %v893_v50, %v2008_v6  ;;  %v1069_v16 = vmul.f32 %v1023_v45, %v2008_v6  ;;  %v898_v60 = vrot.slane %v1793_v2, 6  ;;  %v1028_v17 = vrot.slane %v1793_v2, 3  ;;  %vm2771_vm10 = vmmov %vm2769_vm6 }
 0x151   :  { %v895_v23 = vrot.slane %v1795_v48, 6  ;;  %v1025_v28 = vrot.slane %v1795_v48, 3  ;;  %vm2773_vm12 = vmmov %vm2769_vm6  ;;  %1800 = vrcp.f32 %v752_v59  ;;  %vm1343_vm15 = vcmp.ne.s32.totalorder %v2435_v37, 0 }
 0x152   :  { %v955_v46 = vmul.f32 2.0, %v939_v63  ;;  %v1085_v35 = vmul.f32 2.0, %v1069_v16  ;;  %v899_v36 = vsel %vm2768_vm14, %v897_v10, %v898_v60  ;;  %v1029_v47 = vsel %vm2769_vm6, %v1027_v62, %v1028_v17 }
 0x153   :  { %v1797_v26 = vpop.eup %1796  ;;  %v941_v34 = vmul.f32 %v899_v36, %v2010_v7  ;;  %v1071_v6 = vmul.f32 %v1029_v47, %v2010_v7  ;;  %v896_v49 = vsel %vm2770_vm9, %v894_v42, %v895_v23  ;;  %v1026_v25 = vsel %vm2771_vm10, %v1024_v14, %v1025_v28 }
 0x154   :  { %v972_v51 = vmul.f32 0.06666667, %v955_v46  ;;  %v1101_v30 = vmul.f32 0.06666667, %v1085_v35  ;;  %v940_v39 = vmul.f32 %v896_v49, %v2017_v11  ;;  %v1070_v32 = vmul.f32 %v1026_v25, %v2017_v11 }
 0x155   :  { %v957_v40 = vmul.f32 2.0, %v941_v34  ;;  %v1087_v54 = vmul.f32 2.0, %v1071_v6  ;;  %v901_v53 = vrot.slane %v1797_v26, 6  ;;  %v1031_v41 = vrot.slane %v1797_v26, 3 }
 0x156   :  { %v2475_v55 = vadd.f32 -1.0, %v972_v51  ;;  %v1712_v31 = vadd.f32 -1.0, %v1101_v30  ;;  %v956_v38 = vmul.f32 2.0, %v940_v39  ;;  %v1086_v8 = vmul.f32 2.0, %v1070_v32  ;;  %v2480_v52 = vpop.eup %1798 }
 0x157   :  { %v974_v7 = vmul.f32 0.06666667, %v957_v40  ;;  %v1103_v4 = vmul.f32 0.06666667, %v1087_v54  ;;  %v902_v5 = vsel %vm2772_vm7, %v900_v15, %v901_v53  ;;  %v1032_v18 = vsel %vm2773_vm12, %v1030_v44, %v1031_v41 }
 0x158   :  { %v1165_v11 = vand.u32 2147483647, %v1712_v31  ;;  %v942_v9 = vmul.f32 %v902_v5, %v2019_v12  ;;  %v2486_v10 = vsel %vm720_vm8, 1, %v1864_v24  ;;  %v973_v61 = vmul.f32 0.06666667, %v956_v38 }
 0x159   :  { %v2488_v62 = vadd.f32 -1.0, %v974_v7  ;;  %v1714_v42 = vadd.f32 -1.0, %v1103_v4  ;;  %v1102_v27 = vmul.f32 0.06666667, %v1086_v8  ;;  %v1133_v14 = vand.u32 2147483647, %v2475_v55 }
 0x15a   :  { %vm1181_vm5 = vcmp.le.f32.partialorder %v1165_v11, 1.0  ;;  %v958_v2 = vmul.f32 2.0, %v942_v9  ;;  %v1072_v15 = vmul.f32 %v1032_v18, %v2019_v12  ;;  %v1327_v48 = vrot.slane %v2486_v10, 6 }
 0x15b   :  { %v1197_v44 = vsel %vm1181_vm5, 1, %v1864_v24  ;;  %v1135_v50 = vand.u32 2147483647, %v2488_v62  ;;  %v1167_v45 = vand.u32 2147483647, %v1714_v42  ;;  %v2496_v16 = vadd.f32 -1.0, %v973_v61  ;;  %v2523_v51 = vpop.eup %1800 }
 0x15c   :  { %v1213_v63 = vrot.slane %v1197_v44, 3  ;;  %v1713_v60 = vadd.f32 -1.0, %v1102_v27  ;;  %v975_v17 = vmul.f32 0.06666667, %v958_v2  ;;  %v1405_v23 = vrot.slane %v1712_v31, 3 }
 0x15d   :  { %vm1183_vm11 = vcmp.le.f32.partialorder %v1167_v45, 1.0  ;;  %v1088_v28 = vmul.f32 2.0, %v1072_v15  ;;  %vm719_vm2 = vcmp.gt.f32.partialorder %v2057_v13, 0.0  ;;  %vm1149_vm8 = vcmp.le.f32.partialorder %v1133_v14, 1.0 }
 0x15e   :  { %vm1229_vm4 = vcmp.ne.s32.totalorder %v1213_v63, 0  ;;  %v1199_v12 = vsel %vm1183_vm11, 1, %v1864_v24  ;;  %v1166_v59 = vand.u32 2147483647, %v1713_v60  ;;  %vm1342_vm13 = vcmp.ne.s32.totalorder %v2440_v58, 0 }
 0x15f   :  { %vm1245_vm14 = vmand %vm1149_vm8, %vm1229_vm4  ;;  %v1215_v46 = vrot.slane %v1199_v12, 3  ;;  %v1134_v35 = vand.u32 2147483647, %v2496_v16  ;;  %v2502_v36 = vadd.f32 -1.0, %v975_v17  ;;  %v1104_v47 = vmul.f32 0.06666667, %v1088_v28 }
 0x160   :  { %vm2506_vm6 = vmand %vm1245_vm14, %vm1341_vm1  ;;  %vm2510_vm9 = vcmp.le.f32.partialorder %v1135_v50, 1.0  ;;  %v1407_v6 = vrot.slane %v1714_v42, 3  ;;  %vm1182_vm10 = vcmp.le.f32.partialorder %v1166_v59, 1.0  ;;  %vm721_vm7 = vcmp.gt.f32.partialorder %v2059_v20, 0.0 }
 0x161   :  { %v1373_v49 = vsel %vm2506_vm6, %v2475_v55, 0.0  ;;  %v1437_v25 = vsel %vm2506_vm6, %v1405_v23, 0.0  ;;  %v1728_v33 = vsel %vm2506_vm6, 1.0, %v1863_v0  ;;  %vm1231_vm1 = vcmp.ne.s32.totalorder %v1215_v46, 0 }
 0x162   :  { %v1501_v30 = vrot.slane %v1437_v25, 5  ;;  %v1549_v39 = vrot.slane %v1728_v33, 2  ;;  %vm1247_vm12 = vmand %vm2510_vm9, %vm1231_vm1  ;;  %v1198_v32 = vsel %vm1182_vm10, 1, %v1864_v24  ;;  %v2528_v40 = vadd.f32 -1.0, %v1104_v47 }
 0x163   :  { %vm2532_vm5 = vmand %vm1247_vm12, %vm1343_vm15  ;;  %vm2536_vm11 = vcmp.le.f32.partialorder %v1134_v35, 1.0  ;;  %v1214_v41 = vrot.slane %v1198_v32, 3  ;;  %v1136_v55 = vand.u32 2147483647, %v2502_v36  ;;  %v751_v31 = vsel %vm719_vm2, %v2057_v13, 1.0 }
 0x164   :  { %v1582_v38 = vsel %vm1573_vm0, %v1373_v49, %v1501_v30  ;;  %1631 = vst [vmem:[#allocation5 + $0xc0] sm:$0x1] %v1549_v39  ;;  %v1375_v37 = vsel %vm2532_vm5, %v2488_v62, 0.0  ;;  %v1439_v8 = vsel %vm2532_vm5, %v1407_v6, 0.0  ;;  %v1730_v7 = vsel %vm2532_vm5, 1.0, %v1863_v0 }
 0x165   :  { %v1599_v4 = vsel %vm1590_vm3, %v1582_v38, %v1549_v39  ;;  %v1503_v5 = vrot.slane %v1439_v8, 5  ;;  %v1551_v18 = vrot.slane %v1730_v7, 2  ;;  %vm1230_vm15 = vcmp.ne.s32.totalorder %v1214_v41, 0 }
 0x166   :  { %1615 = vst [vmem:[#allocation5 + $0x40] sm:$0xff] %v1599_v4  ;;  %vm1246_vm8 = vmand %vm2536_vm11, %vm1230_vm15  ;;  %v1406_v11 = vrot.slane %v1713_v60, 3  ;;  %v1168_v9 = vand.u32 2147483647, %v2528_v40  ;;  %vm1344_vm4 = vcmp.ne.s32.totalorder %v2444_v21, 0  ;;  %1802 = vrcp.f32 %v751_v31 }
 0x167   :  { %v1266_v62 = vsel %vm719_vm2, 1, %v1864_v24  ;;  %v1584_v42 = vsel %vm1573_vm0, %v1375_v37, %v1503_v5  ;;  %1633 = vst [vmem:[#allocation5 + $0xd0] sm:$0x1] %v1551_v18  ;;  %vm2564_vm14 = vmand %vm1246_vm8, %vm1342_vm13  ;;  %vm2568_vm6 = vcmp.le.f32.partialorder %v1136_v55, 1.0  ;;  %v753_v14 = vsel %vm721_vm7, %v2059_v20, 1.0 }
 0x168   :  { %vm734_vm9 = vcmp.gt.f32.partialorder %v2073_v43, 0.0  ;;  %v1601_v2 = vsel %vm1590_vm3, %v1584_v42, %v1551_v18  ;;  %v1374_v58 = vsel %vm2564_vm14, %v2496_v16, 0.0  ;;  %v1438_v15 = vsel %vm2564_vm14, %v1406_v11, 0.0 }
 0x169   :  { %v1729_v44 = vsel %vm2564_vm14, 1.0, %v1863_v0  ;;  %1617 = vst [vmem:[#allocation5 + $0x50] sm:$0xff] %v1601_v2  ;;  %v1502_v50 = vrot.slane %v1438_v15, 5  ;;  %vm1184_vm2 = vcmp.le.f32.partialorder %v1168_v9, 1.0  ;;  %v1408_v63 = vrot.slane %v2528_v40, 3 }
 0x16a   :  { %v1550_v45 = vrot.slane %v1729_v44, 2  ;;  %v1200_v60 = vsel %vm1184_vm2, 1, %v1864_v24  ;;  %1804 = vrcp.f32 %v753_v14  ;;  %v766_v17 = vsel %vm734_vm9, %v2073_v43, 1.0 }
 0x16b   :  { %v1281_v16 = vsel %vm734_vm9, 1, %v1864_v24  ;;  %v1583_v23 = vsel %vm1573_vm0, %v1374_v58, %v1502_v50  ;;  %v1216_v28 = vrot.slane %v1200_v60, 3  ;;  %1806 = vrcp.f32 %v766_v17 }
 0x16c   :  { %1632 = vst [vmem:[#allocation5 + $0xc8] sm:$0x1] %v1550_v45  ;;  %v1322_v12 = vrot.slane %v1281_v16, 6  ;;  %v1600_v59 = vsel %vm1590_vm3, %v1583_v23, %v1550_v45  ;;  %vm736_vm13 = vcmp.gt.f32.partialorder %v2075_v29, 0.0  ;;  %vm735_vm10 = vcmp.gt.f32.partialorder %v2090_v56, 0.0 }
 0x16d   :  { %vm737_vm1 = vcmp.gt.f32.partialorder %v2098_v1, 0.0  ;;  %1616 = vst [vmem:[#allocation5 + $0x48] sm:$0xff] %v1600_v59  ;;  %vm1232_vm12 = vcmp.ne.s32.totalorder %v1216_v28, 0  ;;  %vm2786_vm5 = vcmask 1041408   ;;  %v768_v46 = vsel %vm736_vm13, %v2075_v29, 1.0 }
 0x16e   :  { %v2597_v43 = vsel %vm2786_vm5, %v1321_v57, %v1322_v12  ;;  %v1283_v35 = vsel %vm736_vm13, 1, %v1864_v24  ;;  %vm1248_vm11 = vmand %vm2568_vm6, %vm1232_vm12  ;;  %v1268_v47 = vsel %vm721_vm7, 1, %v1864_v24  ;;  %1808 = vrcp.f32 %v768_v46 }
 0x16f   :  { %v1328_v26 = vrot.slane %v1283_v35, 6  ;;  %v767_v34 = vsel %vm735_vm10, %v2090_v56, 1.0  ;;  %vm2609_vm15 = vmand %vm1248_vm11, %vm1344_vm4  ;;  %v1282_v29 = vsel %vm735_vm10, 1, %v1864_v24  ;;  %v769_v57 = vsel %vm737_vm1, %v2098_v1, 1.0 }
 0x170   :  { %1810 = vrcp.f32 %v767_v34  ;;  %v1284_v6 = vsel %vm737_vm1, 1, %v1864_v24  ;;  %v1803_v49 = vpop.eup %1802  ;;  %v1376_v25 = vsel %vm2609_vm15, %v2502_v36, 0.0  ;;  %v1440_v56 = vsel %vm2609_vm15, %v1408_v63, 0.0  ;;  %vm2789_vm7 = vmmov %vm2786_vm5 }
 0x171   :  { %v1731_v21 = vsel %vm2609_vm15, 1.0, %v1863_v0  ;;  %v2627_v33 = vsel %vm2789_vm7, %v1327_v48, %v1328_v26  ;;  %v1504_v1 = vrot.slane %v1440_v56, 5  ;;  %v1324_v39 = vrot.slane %v1266_v62, 6  ;;  %vm2790_vm8 = vmmov %vm2786_vm5 }
 0x172   :  { %v1552_v30 = vrot.slane %v1731_v21, 2  ;;  %v1325_v32 = vrot.slane %v1282_v29, 6  ;;  %1812 = vrcp.f32 %v769_v57  ;;  %v1331_v40 = vrot.slane %v1284_v6, 6  ;;  %vm2791_vm4 = vmmov %vm2786_vm5 }
 0x173   :  { %v1585_v36 = vsel %vm1573_vm0, %v1376_v25, %v1504_v1  ;;  %v1330_v54 = vrot.slane %v1268_v47, 6  ;;  %v903_v31 = vrot.slane %v2480_v52, 6  ;;  %v1033_v38 = vrot.slane %v2480_v52, 3  ;;  %vm2792_vm14 = vmmov %vm2791_vm4 }
 0x174   :  { %1634 = vst [vmem:[#allocation5 + $0xd8] sm:$0x1] %v1552_v30  ;;  %v2631_v53 = vsel %vm2790_vm8, %v1324_v39, %v1325_v32  ;;  %v1805_v41 = vpop.eup %1804  ;;  %v1602_v55 = vsel %vm1590_vm3, %v1585_v36, %v1552_v30  ;;  %v909_v7 = vrot.slane %v2523_v51, 6  ;;  %v1039_v4 = vrot.slane %v2523_v51, 3  ;;  %vm2794_vm9 = vmmov %vm2791_vm4 }
 0x175   :  { %v1807_v10 = vpop.eup %1806  ;;  %1618 = vst [vmem:[#allocation5 + $0x58] sm:$0xff] %v1602_v55  ;;  %v2635_v48 = vsel %vm2791_vm4, %v1330_v54, %v1331_v40  ;;  %v906_v18 = vrot.slane %v1803_v49, 6  ;;  %v1036_v11 = vrot.slane %v1803_v49, 3  ;;  %vm2793_vm6 = vcmask 1044480   ;;  %vm2796_vm13 = vmmov %vm2791_vm4 }
 0x176   :  { %v904_v37 = vrot.slane %v1807_v10, 6  ;;  %v1034_v8 = vrot.slane %v1807_v10, 3  ;;  %v912_v2 = vrot.slane %v1805_v41, 6  ;;  %v1042_v58 = vrot.slane %v1805_v41, 3  ;;  %vm2795_vm2 = vmmov %vm2793_vm6 }
 0x177   :  { %vm2797_vm10 = vmmov %vm2795_vm2  ;;  %vm1345_vm15 = vcmp.ne.s32.totalorder %v2597_v43, 0 }
 0x178   :  { %v1809_v5 = vpop.eup %1808  ;;  %v905_v9 = vsel %vm2792_vm14, %v903_v31, %v904_v37  ;;  %v1035_v62 = vsel %vm2793_vm6, %v1033_v38, %v1034_v8  ;;  %vm2798_vm1 = vmmov %vm2791_vm4 }
 0x179   :  { %v943_v61 = vmul.f32 %v905_v9, %v2053_v3  ;;  %v1073_v27 = vmul.f32 %v1035_v62, %v2053_v3  ;;  %v910_v14 = vrot.slane %v1809_v5, 6  ;;  %v1040_v52 = vrot.slane %v1809_v5, 3  ;;  %vm2799_vm12 = vmmov %vm2795_vm2 }
 0x17a   :  { %v1811_v42 = vpop.eup %1810 }
 0x17b   :  { %v907_v15 = vrot.slane %v1811_v42, 6  ;;  %v1037_v44 = vrot.slane %v1811_v42, 3  ;;  %v959_v50 = vmul.f32 2.0, %v943_v61  ;;  %v1089_v51 = vmul.f32 2.0, %v1073_v27 }
 0x17c   :  { %v911_v45 = vsel %vm2794_vm9, %v909_v7, %v910_v14  ;;  %v1041_v63 = vsel %vm2795_vm2, %v1039_v4, %v1040_v52  ;;  %v1813_v60 = vpop.eup %1812  ;;  %vm1347_vm9 = vcmp.ne.s32.totalorder %v2627_v33, 0 }
 0x17d   :  { %v945_v17 = vmul.f32 %v911_v45, %v2055_v19  ;;  %v1075_v16 = vmul.f32 %v1041_v63, %v2055_v19  ;;  %v908_v23 = vsel %vm2796_vm13, %v906_v18, %v907_v15  ;;  %v1038_v3 = vsel %vm2797_vm10, %v1036_v11, %v1037_v44 }
 0x17e   :  { %v976_v28 = vmul.f32 0.06666667, %v959_v50  ;;  %v1105_v12 = vmul.f32 0.06666667, %v1089_v51  ;;  %v944_v59 = vmul.f32 %v908_v23, %v2057_v13  ;;  %v1074_v46 = vmul.f32 %v1038_v3, %v2057_v13 }
 0x17f   :  { %v961_v35 = vmul.f32 2.0, %v945_v17  ;;  %v1091_v47 = vmul.f32 2.0, %v1075_v16  ;;  %v913_v26 = vrot.slane %v1813_v60, 6  ;;  %v1043_v34 = vrot.slane %v1813_v60, 3 }
 0x180   :  { %v1700_v22 = vadd.f32 -1.0, %v976_v28  ;;  %v1716_v29 = vadd.f32 -1.0, %v1105_v12  ;;  %v960_v57 = vmul.f32 2.0, %v944_v59  ;;  %v1090_v6 = vmul.f32 2.0, %v1074_v46 }
 0x181   :  { %v978_v49 = vmul.f32 0.06666667, %v961_v35  ;;  %v1107_v19 = vmul.f32 0.06666667, %v1091_v47  ;;  %v914_v25 = vsel %vm2798_vm1, %v912_v2, %v913_v26  ;;  %v1044_v56 = vsel %vm2799_vm12, %v1042_v58, %v1043_v34 }
 0x182   :  { %v1137_v21 = vand.u32 2147483647, %v1700_v22  ;;  %v1169_v1 = vand.u32 2147483647, %v1716_v29  ;;  %v946_v30 = vmul.f32 %v914_v25, %v2059_v20  ;;  %v977_v32 = vmul.f32 0.06666667, %v960_v57 }
 0x183   :  { %v1702_v39 = vadd.f32 -1.0, %v978_v49  ;;  %v1718_v13 = vadd.f32 -1.0, %v1107_v19  ;;  %v1106_v40 = vmul.f32 0.06666667, %v1090_v6  ;;  %v1076_v54 = vmul.f32 %v1044_v56, %v2059_v20 }
 0x184   :  { %vm1185_vm5 = vcmp.le.f32.partialorder %v1169_v1, 1.0  ;;  %v962_v36 = vmul.f32 2.0, %v946_v30  ;;  %v1701_v38 = vadd.f32 -1.0, %v977_v32  ;;  %vm1153_vm11 = vcmp.le.f32.partialorder %v1137_v21, 1.0 }
 0x185   :  { %v1201_v41 = vsel %vm1185_vm5, 1, %v1864_v24  ;;  %v1171_v55 = vand.u32 2147483647, %v1718_v13  ;;  %v1139_v31 = vand.u32 2147483647, %v1702_v39  ;;  %v1717_v37 = vadd.f32 -1.0, %v1106_v40 }
 0x186   :  { %v1217_v10 = vrot.slane %v1201_v41, 3  ;;  %v1092_v8 = vmul.f32 2.0, %v1076_v54  ;;  %v979_v5 = vmul.f32 0.06666667, %v962_v36  ;;  %v1409_v18 = vrot.slane %v1716_v29, 3 }
 0x187   :  { %vm1187_vm7 = vcmp.le.f32.partialorder %v1171_v55, 1.0  ;;  %v1170_v4 = vand.u32 2147483647, %v1717_v37  ;;  %v1138_v11 = vand.u32 2147483647, %v1701_v38  ;;  %vm1155_vm6 = vcmp.le.f32.partialorder %v1139_v31, 1.0 }
 0x188   :  { %vm1233_vm8 = vcmp.ne.s32.totalorder %v1217_v10, 0  ;;  %v1203_v7 = vsel %vm1187_vm7, 1, %v1864_v24  ;;  %v1108_v9 = vmul.f32 0.06666667, %v1092_v8  ;;  %v1411_v43 = vrot.slane %v1718_v13, 3 }
 0x189   :  { %vm1249_vm4 = vmand %vm1153_vm11, %vm1233_vm8  ;;  %v1219_v20 = vrot.slane %v1203_v7, 3  ;;  %vm1186_vm2 = vcmp.le.f32.partialorder %v1170_v4, 1.0  ;;  %vm2677_vm12 = vcmp.le.f32.partialorder %v1138_v11, 1.0  ;;  %v1703_v50 = vadd.f32 -1.0, %v979_v5 }
 0x18a   :  { %vm2660_vm14 = vmand %vm1249_vm4, %vm1345_vm15  ;;  %v1202_v2 = vsel %vm1186_vm2, 1, %v1864_v24  ;;  %v1719_v58 = vadd.f32 -1.0, %v1108_v9  ;;  %vm1346_vm15 = vcmp.ne.s32.totalorder %v2631_v53, 0  ;;  %v1410_v3 = vrot.slane %v1717_v37, 3 }
 0x18b   :  { %v1377_v42 = vsel %vm2660_vm14, %v1700_v22, 0.0  ;;  %v1441_v61 = vsel %vm2660_vm14, %v1409_v18, 0.0  ;;  %v1732_v27 = vsel %vm2660_vm14, 1.0, %v1863_v0  ;;  %vm1235_vm13 = vcmp.ne.s32.totalorder %v1219_v20, 0 }
 0x18c   :  { %v1505_v14 = vrot.slane %v1441_v61, 5  ;;  %v1553_v52 = vrot.slane %v1732_v27, 2  ;;  %vm1251_vm10 = vmand %vm1155_vm6, %vm1235_vm13  ;;  %v1218_v44 = vrot.slane %v1202_v2, 3  ;;  %v1172_v28 = vand.u32 2147483647, %v1719_v58 }
 0x18d   :  { %vm2673_vm1 = vmand %vm1251_vm10, %vm1347_vm9  ;;  %v1140_v22 = vand.u32 2147483647, %v1703_v50  ;;  %vm1348_vm9 = vcmp.ne.s32.totalorder %v2635_v48, 0  ;;  %v1412_v49 = vrot.slane %v1719_v58, 3 }
 0x18e   :  { %v1586_v51 = vsel %vm1573_vm0, %v1377_v42, %v1505_v14  ;;  %1635 = vst [vmem:[#allocation5 + $0xe0] sm:$0x1] %v1553_v52  ;;  %v1379_v45 = vsel %vm2673_vm1, %v1702_v39, 0.0  ;;  %v1443_v63 = vsel %vm2673_vm1, %v1411_v43, 0.0  ;;  %v1734_v60 = vsel %vm2673_vm1, 1.0, %v1863_v0 }
 0x18f   :  { %v1603_v17 = vsel %vm1590_vm3, %v1586_v51, %v1553_v52  ;;  %v1507_v16 = vrot.slane %v1443_v63, 5  ;;  %v1555_v23 = vrot.slane %v1734_v60, 2  ;;  %vm1234_vm5 = vcmp.ne.s32.totalorder %v1218_v44, 0 }
 0x190   :  { %1619 = vst [vmem:[#allocation5 + $0x60] sm:$0xff] %v1603_v17  ;;  %vm1250_vm11 = vmand %vm2677_vm12, %vm1234_vm5  ;;  %vm1188_vm8 = vcmp.le.f32.partialorder %v1172_v28, 1.0  ;;  %vm1156_vm4 = vcmp.le.f32.partialorder %v1140_v22, 1.0 }
 0x191   :  { %v1588_v12 = vsel %vm1573_vm0, %v1379_v45, %v1507_v16  ;;  %1637 = vst [vmem:[#allocation5 + $0xf0] sm:$0x1] %v1555_v23  ;;  %vm1362_vm7 = vmand %vm1250_vm11, %vm1346_vm15  ;;  %v1204_v29 = vsel %vm1188_vm8, 1, %v1864_v24 }
 0x192   :  { %v1605_v59 = vsel %vm1590_vm3, %v1588_v12, %v1555_v23  ;;  %v1378_v46 = vsel %vm1362_vm7, %v1701_v38, 0.0  ;;  %v1442_v35 = vsel %vm1362_vm7, %v1410_v3, 0.0  ;;  %v1733_v47 = vsel %vm1362_vm7, 1.0, %v1863_v0 }
 0x193   :  { %1621 = vst [vmem:[#allocation5 + $0x70] sm:$0xff] %v1605_v59  ;;  %v1506_v26 = vrot.slane %v1442_v35, 5  ;;  %v1554_v34 = vrot.slane %v1733_v47, 2  ;;  %v1220_v57 = vrot.slane %v1204_v29, 3 }
 0x195   :  { %v1587_v53 = vsel %vm1573_vm0, %v1378_v46, %v1506_v26  ;;  %1636 = vst [vmem:[#allocation5 + $0xe8] sm:$0x1] %v1554_v34  ;;  %vm1236_vm14 = vcmp.ne.s32.totalorder %v1220_v57, 0 }
 0x196   :  { %v1604_v6 = vsel %vm1590_vm3, %v1587_v53, %v1554_v34  ;;  %vm1252_vm6 = vmand %vm1156_vm4, %vm1236_vm14 }
 0x197   :  { %1620 = vst [vmem:[#allocation5 + $0x68] sm:$0xff] %v1604_v6  ;;  %vm1364_vm2 = vmand %vm1252_vm6, %vm1348_vm9 }
 0x198   :  { %v1380_v19 = vsel %vm1364_vm2, %v1703_v50, 0.0  ;;  %v1444_v25 = vsel %vm1364_vm2, %v1412_v49, 0.0  ;;  %v1735_v24 = vsel %vm1364_vm2, 1.0, %v1863_v0 }
 0x199   :  { %v1508_v56 = vrot.slane %v1444_v25, 5  ;;  %v1556_v21 = vrot.slane %v1735_v24, 2 }
 0x19b   :  { %v1589_v1 = vsel %vm1573_vm0, %v1380_v19, %v1508_v56  ;;  %1638 = vst [vmem:[#allocation5 + $0xf8] sm:$0x1] %v1556_v21 }
 0x19c   :  { %v1606_v30 = vsel %vm1590_vm3, %v1589_v1, %v1556_v21 }
 0x19d   :  { %1622 = vst [vmem:[#allocation5 + $0x78] sm:$0xff] %v1606_v30 }
 0x19e   :  { %1847 = shalt.err (!%p1844_p12)
}
 0x19f   :  { %s1848_s28 = scalar_lea.hbm %s2717_s2, 4096 }
 0x1a0   :  { %p1849_p13 = scmp.ne.s32.totalorder %s2717_s2, %s1848_s28  ;;  %p1852_p0 = scmp.lt.u32.totalorder %s1848_s28, %s2717_s2 }
 0x1a2   :  { %p1854_p1 = pnand %p1852_p0, %p1849_p13 }
 0x1a4   :  { %1857 = shalt.err (!%p1854_p1)
}
 0x1a5   :  { %s1866_s5 = smov 2048   ;;  %s1867_s6 = smov 128  }
 0x1a6   :  { %1650 = dma.vmem_to_hbm [thread:$0]  %s1645_s24, 4096, %s2717_s2, [#allocation4], %s1866_s5, %s1866_s5, %s1867_s6  }
 0x1a7   :  { %1860 = dma.done.wait [#allocation4], 4096  }
 0x1a8   :  { %1861 = vsyncadd [#allocation4], 4294963200 }
 0x1a9   :  { %1654 = vsyncpa [#allocation3], 1 }
 0x1aa   :  { %1655 = vsyncpa [#allocation4], 1 }

</bundles_post_ra>
